<compile_context>
chip_gen: v5e
topology: v5e:2x2
jax: 0.10.0
libtpu: 0.0.40
codegen_flags: <defaults>
</compile_context>

<pallas_src>
import math

import jax
import jax.numpy as jnp
from jax.experimental import pallas as pl
from jax.experimental.pallas import tpu as pltpu

CP = 128   # padded channel count == lane width
SUB = 8    # f32 sublane tile


# ------------------------------ planning ---------------------------------- #

def _round_up(x, m):
    return ((x + m - 1) // m) * m


def _layer_geom(h, w, k, s):
    """TF 'SAME' padding geometry (Conv2dSamePad semantics)."""
    oh, ow = math.ceil(h / s), math.ceil(w / s)
    pad_h = max((oh - 1) * s + k - h, 0)
    pad_w = max((ow - 1) * s + k - w, 0)
    return dict(oh=oh, ow=ow, pt=pad_h // 2, pl=pad_w // 2,
                hp=h + pad_h, wp=w + pad_w)


def _build_plan(H, W, n_hidden, kernel_sizes, stride=2):
    chans = [1] + list(n_hidden)
    plan, h, w = [], H, W
    for idx, k in enumerate(kernel_sizes):
        g = _layer_geom(h, w, k, stride)
        owp = _round_up(g["ow"], SUB)                       # tile-aligned (over-computed) width
        w_slab = _round_up(max(g["wp"], k + stride * (owp - 1)), SUB)
        plan.append(dict(k=k, s=stride, cin=chans[idx], cout=chans[idx + 1],
                         oh=g["oh"], ow=g["ow"], owp=owp,
                         pt=g["pt"], pl=g["pl"],
                         h_slab=g["hp"], w_slab=w_slab))
        h, w = g["oh"], g["ow"]
    return plan


# ----------------------------- Pallas kernel ------------------------------ #

def _make_encoder_kernel(B, plan):
    L = len(plan)

    def kernel(*refs):
        x_ref = refs[0]
        w_refs = [refs[1 + 2 * i] for i in range(L)]
        b_refs = [refs[2 + 2 * i] for i in range(L)]
        o_ref = refs[1 + 2 * L]
        slabs = refs[2 + 2 * L:]          # L-1 inter-layer VMEM slabs

        cur = x_ref                        # padded activation slab of layer 0
        for li, lay in enumerate(plan):
            k, s = lay["k"], lay["s"]
            oh, ow, owp = lay["oh"], lay["ow"], lay["owp"]
            m = B * oh * owp

            # conv as k*k tap matmuls, fused im2col via strided reads from VMEM
            acc = jnp.zeros((m, CP), jnp.float32)
            for i in range(k):
                for j in range(k):
                    tap = cur[:, pl.ds(i, oh, stride=s),
                                 pl.ds(j, owp, stride=s), :]        # (B, oh, owp, CP)
                    acc = acc + jnp.dot(tap.reshape(m, CP),
                                        w_refs[li][i * k + j],
                                        preferred_element_type=jnp.float32)
            act = jnp.maximum(acc + b_refs[li][...], 0.0)           # bias + ReLU

            if li + 1 < L:
                nxt = plan[li + 1]
                slab = slabs[li]
                slab[...] = jnp.zeros_like(slab)                    # TF-SAME pad = zeros
                a4 = act.reshape(B, oh, owp, CP)
                slab[:, nxt["pt"]:nxt["pt"] + oh,
                        nxt["pl"]:nxt["pl"] + ow, :] = a4[:, :, :ow, :]
                cur = slab
            else:
                o_ref[...] = act.reshape(B, oh, owp, CP).astype(o_ref.dtype)

    return kernel


# ------------------------------- wrapper ----------------------------------- #

def encoder_forward(x_nchw, params, kernel_sizes):
    """Forward matching Encoder.forward (NCHW in / NCHW out, like PyTorch)."""
    B, cin0, H, W = x_nchw.shape
    n_hidden = [w.shape[3] for (w, _) in params]
    assert max([cin0] + n_hidden) <= CP, "channels > 128 not supported here"
    plan = _build_plan(H, W, n_hidden, kernel_sizes)

    # cheap XLA-side prep: lane-dense padded input / weights / bias
    x = jnp.transpose(x_nchw, (0, 2, 3, 1)).astype(jnp.float32)      # NHWC
    l0 = plan[0]
    x_slab = jnp.zeros((B, l0["h_slab"], l0["w_slab"], CP), jnp.float32)
    x_slab = x_slab.at[:, l0["pt"]:l0["pt"] + H,
                          l0["pl"]:l0["pl"] + W, :cin0].set(x)

    args = [x_slab]
    for (w, b), lay in zip(params, plan):
        k, ci, co = lay["k"], lay["cin"], lay["cout"]
        wp = jnp.zeros((k * k, CP, CP), jnp.float32)
        wp = wp.at[:, :ci, :co].set(w.reshape(k * k, ci, co))
        bp = jnp.zeros((1, CP), jnp.float32).at[0, :co].set(b)
        args += [wp, bp]

    last = plan[-1]
    out_sds = jax.ShapeDtypeStruct((B, last["oh"], last["owp"], CP), jnp.float32)

    def full_spec(shape):
        nd = len(shape)
        return pl.BlockSpec(shape, lambda i, nd=nd: (0,) * nd)

    flops = sum(2 * B * l["oh"] * l["owp"] * CP * CP * l["k"] * l["k"] for l in plan)
    bytes_accessed = sum(int(a.size) * 4 for a in args) + math.prod(out_sds.shape) * 4

    out = pl.pallas_call(
        _make_encoder_kernel(B, plan),
        out_shape=out_sds,
        grid_spec=pltpu.PrefetchScalarGridSpec(
            num_scalar_prefetch=0,
            grid=(1,),
            in_specs=[full_spec(a.shape) for a in args],
            out_specs=full_spec(out_sds.shape),
            scratch_shapes=[pltpu.VMEM((B, l["h_slab"], l["w_slab"], CP), jnp.float32)
                            for l in plan[1:]],
        ),
        compiler_params=pltpu.CompilerParams(dimension_semantics=("arbitrary",)),
        cost_estimate=pl.CostEstimate(flops=flops, transcendentals=0,
                                      bytes_accessed=bytes_accessed),
    )(*args)

    out = out[:, :, :last["ow"], :last["cout"]]      # drop over-compute + channel pad
    return jnp.transpose(out, (0, 3, 1, 2))          # NHWC -> NCHW


# ---------------------------- params / reference --------------------------- #

def init_params(key, n_hidden, kernel_size):
    """Deterministic synthetic params. Weights stored HWIO: (k, k, cin, cout)."""
    chans = [1] + list(n_hidden)
    params = []
    for i, k in enumerate(kernel_size):
        key, kw_key, kb_key = jax.random.split(key, 3)
        cin, cout = chans[i], chans[i + 1]
        bound = 1.0 / math.sqrt(cin * k * k)
        w = jax.random.uniform(kw_key, (k, k, cin, cout), jnp.float32, -bound, bound)
        b = jax.random.uniform(kb_key, (cout,), jnp.float32, -bound, bound)
        params.append((w, b))
    return params


def reference_forward(x_nchw, params, kernel_sizes):
    """Pure-JAX reference (XLA conv) for correctness checking."""
    x = jnp.transpose(x_nchw, (0, 2, 3, 1))
    for (w, b), k in zip(params, kernel_sizes):
        h_, w_ = x.shape[1], x.shape[2]
        g = _layer_geom(h_, w_, k, 2)
        xp = jnp.pad(x, ((0, 0),
                         (g["pt"], g["hp"] - h_ - g["pt"]),
                         (g["pl"], g["wp"] - w_ - g["pl"]),
                         (0, 0)))
        y = jax.lax.conv_general_dilated(
            xp, w, window_strides=(2, 2), padding="VALID",
            dimension_numbers=("NHWC", "HWIO", "NHWC"))
        x = jnp.maximum(y + b, 0.0)
    return jnp.transpose(x, (0, 3, 1, 2))


# --------------------------------- main ------------------------------------ #

if __name__ == "__main__":
    key = jax.random.PRNGKey(0)
    n_hidden = [4, 8]          # Encoder(n_hidden=[4, 8], kernel_size=[3, 3])
    kernel_size = [3, 3]

    k_x, k_p = jax.random.split(key)
    # PyTorch NCHW input; first conv has in_channels = 1 ([1] + n_hidden)
    x = jax.random.normal(k_x, (2, 1, 16, 16), jnp.float32)
    params = init_params(k_p, n_hidden, kernel_size)

    out = jax.block_until_ready(encoder_forward(x, params, kernel_size))
    ref = jax.block_until_ready(reference_forward(x, params, kernel_size))

    assert out.shape == (2, 8, 4, 4), out.shape
    if not bool(jnp.allclose(out, ref, atol=1e-4, rtol=1e-4)):
        raise SystemExit("Pallas result mismatch vs XLA reference")

    print("KERNEL_OK")
</pallas_src>

<mosaic_0001>
module attributes {stable_mosaic.version = 11 : i64} {
  func.func @kernel(%arg0: i32, %arg1: memref<2x17x24x128xf32, #tpu.memory_space<vmem>>, %arg2: memref<9x128x128xf32, #tpu.memory_space<vmem>>, %arg3: memref<1x128xf32, #tpu.memory_space<vmem>>, %arg4: memref<9x128x128xf32, #tpu.memory_space<vmem>>, %arg5: memref<1x128xf32, #tpu.memory_space<vmem>>, %arg6: memref<2x4x8x128xf32, #tpu.memory_space<vmem>>, %arg7: memref<2x9x24x128xf32, #tpu.memory_space<vmem>>) attributes {dimension_semantics = [#tpu.dimension_semantics<arbitrary>], iteration_bounds = array<i64: 1>, scalar_prefetch = 0 : i64, scratch_operands = 1 : i64, tpu.core_type = #tpu.core_type<tc>, window_params = [{pipeline_mode = #tpu.pipeline_mode<synchronous>, transform_indices = @transform_0, window_bounds = array<i64: 2, 17, 24, 128>}, {pipeline_mode = #tpu.pipeline_mode<synchronous>, transform_indices = @transform_1, window_bounds = array<i64: 9, 128, 128>}, {pipeline_mode = #tpu.pipeline_mode<synchronous>, transform_indices = @transform_2, window_bounds = array<i64: 1, 128>}, {pipeline_mode = #tpu.pipeline_mode<synchronous>, transform_indices = @transform_3, window_bounds = array<i64: 9, 128, 128>}, {pipeline_mode = #tpu.pipeline_mode<synchronous>, transform_indices = @transform_4, window_bounds = array<i64: 1, 128>}, {pipeline_mode = #tpu.pipeline_mode<synchronous>, transform_indices = @transform_5, window_bounds = array<i64: 2, 4, 8, 128>}]} {
    %cst = arith.constant 0.000000e+00 : f32
    %0 = vector.broadcast %cst : f32 to vector<128x128xf32>
    %c0 = arith.constant 0 : index
    %c0_0 = arith.constant 0 : index
    %c0_1 = arith.constant 0 : index
    %c0_2 = arith.constant 0 : index
    %1 = tpu.strided_load %arg1[%c0, %c0_0, %c0_1, %c0_2] {strides = array<i32: 1, 2, 2, 1>} : memref<2x17x24x128xf32, #tpu.memory_space<vmem>>, vector<2x8x8x128xf32>
    %2 = vector.shape_cast %1 : vector<2x8x8x128xf32> to vector<128x128xf32>
    %c0_3 = arith.constant 0 : index
    %c0_4 = arith.constant 0 : index
    %c0_5 = arith.constant 0 : index
    %3 = vector.load %arg2[%c0_3, %c0_4, %c0_5] : memref<9x128x128xf32, #tpu.memory_space<vmem>>, vector<1x128x128xf32>
    %4 = vector.shape_cast %3 : vector<1x128x128xf32> to vector<128x128xf32>
    %cst_6 = arith.constant dense<0.000000e+00> : vector<128x128xf32>
    %5 = tpu.matmul %2, %4, %cst_6 {dimension_numbers = #tpu.dot_dimension_numbers<[1], [0], [0], [1], [0, 0, 1, 1], [], []>} : vector<128x128xf32>, vector<128x128xf32>, vector<128x128xf32> -> vector<128x128xf32>
    %6 = arith.addf %0, %5 : vector<128x128xf32>
    %c0_7 = arith.constant 0 : index
    %c0_8 = arith.constant 0 : index
    %c1 = arith.constant 1 : index
    %c0_9 = arith.constant 0 : index
    %7 = tpu.strided_load %arg1[%c0_7, %c0_8, %c1, %c0_9] {strides = array<i32: 1, 2, 2, 1>} : memref<2x17x24x128xf32, #tpu.memory_space<vmem>>, vector<2x8x8x128xf32>
    %8 = vector.shape_cast %7 : vector<2x8x8x128xf32> to vector<128x128xf32>
    %c1_10 = arith.constant 1 : index
    %c0_11 = arith.constant 0 : index
    %c0_12 = arith.constant 0 : index
    %9 = vector.load %arg2[%c1_10, %c0_11, %c0_12] : memref<9x128x128xf32, #tpu.memory_space<vmem>>, vector<1x128x128xf32>
    %10 = vector.shape_cast %9 : vector<1x128x128xf32> to vector<128x128xf32>
    %cst_13 = arith.constant dense<0.000000e+00> : vector<128x128xf32>
    %11 = tpu.matmul %8, %10, %cst_13 {dimension_numbers = #tpu.dot_dimension_numbers<[1], [0], [0], [1], [0, 0, 1, 1], [], []>} : vector<128x128xf32>, vector<128x128xf32>, vector<128x128xf32> -> vector<128x128xf32>
    %12 = arith.addf %6, %11 : vector<128x128xf32>
    %c0_14 = arith.constant 0 : index
    %c0_15 = arith.constant 0 : index
    %c2 = arith.constant 2 : index
    %c0_16 = arith.constant 0 : index
    %13 = tpu.strided_load %arg1[%c0_14, %c0_15, %c2, %c0_16] {strides = array<i32: 1, 2, 2, 1>} : memref<2x17x24x128xf32, #tpu.memory_space<vmem>>, vector<2x8x8x128xf32>
    %14 = vector.shape_cast %13 : vector<2x8x8x128xf32> to vector<128x128xf32>
    %c2_17 = arith.constant 2 : index
    %c0_18 = arith.constant 0 : index
    %c0_19 = arith.constant 0 : index
    %15 = vector.load %arg2[%c2_17, %c0_18, %c0_19] : memref<9x128x128xf32, #tpu.memory_space<vmem>>, vector<1x128x128xf32>
    %16 = vector.shape_cast %15 : vector<1x128x128xf32> to vector<128x128xf32>
    %cst_20 = arith.constant dense<0.000000e+00> : vector<128x128xf32>
    %17 = tpu.matmul %14, %16, %cst_20 {dimension_numbers = #tpu.dot_dimension_numbers<[1], [0], [0], [1], [0, 0, 1, 1], [], []>} : vector<128x128xf32>, vector<128x128xf32>, vector<128x128xf32> -> vector<128x128xf32>
    %18 = arith.addf %12, %17 : vector<128x128xf32>
    %c0_21 = arith.constant 0 : index
    %c1_22 = arith.constant 1 : index
    %c0_23 = arith.constant 0 : index
    %c0_24 = arith.constant 0 : index
    %19 = tpu.strided_load %arg1[%c0_21, %c1_22, %c0_23, %c0_24] {strides = array<i32: 1, 2, 2, 1>} : memref<2x17x24x128xf32, #tpu.memory_space<vmem>>, vector<2x8x8x128xf32>
    %20 = vector.shape_cast %19 : vector<2x8x8x128xf32> to vector<128x128xf32>
    %c3 = arith.constant 3 : index
    %c0_25 = arith.constant 0 : index
    %c0_26 = arith.constant 0 : index
    %21 = vector.load %arg2[%c3, %c0_25, %c0_26] : memref<9x128x128xf32, #tpu.memory_space<vmem>>, vector<1x128x128xf32>
    %22 = vector.shape_cast %21 : vector<1x128x128xf32> to vector<128x128xf32>
    %cst_27 = arith.constant dense<0.000000e+00> : vector<128x128xf32>
    %23 = tpu.matmul %20, %22, %cst_27 {dimension_numbers = #tpu.dot_dimension_numbers<[1], [0], [0], [1], [0, 0, 1, 1], [], []>} : vector<128x128xf32>, vector<128x128xf32>, vector<128x128xf32> -> vector<128x128xf32>
    %24 = arith.addf %18, %23 : vector<128x128xf32>
    %c0_28 = arith.constant 0 : index
    %c1_29 = arith.constant 1 : index
    %c1_30 = arith.constant 1 : index
    %c0_31 = arith.constant 0 : index
    %25 = tpu.strided_load %arg1[%c0_28, %c1_29, %c1_30, %c0_31] {strides = array<i32: 1, 2, 2, 1>} : memref<2x17x24x128xf32, #tpu.memory_space<vmem>>, vector<2x8x8x128xf32>
    %26 = vector.shape_cast %25 : vector<2x8x8x128xf32> to vector<128x128xf32>
    %c4 = arith.constant 4 : index
    %c0_32 = arith.constant 0 : index
    %c0_33 = arith.constant 0 : index
    %27 = vector.load %arg2[%c4, %c0_32, %c0_33] : memref<9x128x128xf32, #tpu.memory_space<vmem>>, vector<1x128x128xf32>
    %28 = vector.shape_cast %27 : vector<1x128x128xf32> to vector<128x128xf32>
    %cst_34 = arith.constant dense<0.000000e+00> : vector<128x128xf32>
    %29 = tpu.matmul %26, %28, %cst_34 {dimension_numbers = #tpu.dot_dimension_numbers<[1], [0], [0], [1], [0, 0, 1, 1], [], []>} : vector<128x128xf32>, vector<128x128xf32>, vector<128x128xf32> -> vector<128x128xf32>
    %30 = arith.addf %24, %29 : vector<128x128xf32>
    %c0_35 = arith.constant 0 : index
    %c1_36 = arith.constant 1 : index
    %c2_37 = arith.constant 2 : index
    %c0_38 = arith.constant 0 : index
    %31 = tpu.strided_load %arg1[%c0_35, %c1_36, %c2_37, %c0_38] {strides = array<i32: 1, 2, 2, 1>} : memref<2x17x24x128xf32, #tpu.memory_space<vmem>>, vector<2x8x8x128xf32>
    %32 = vector.shape_cast %31 : vector<2x8x8x128xf32> to vector<128x128xf32>
    %c5 = arith.constant 5 : index
    %c0_39 = arith.constant 0 : index
    %c0_40 = arith.constant 0 : index
    %33 = vector.load %arg2[%c5, %c0_39, %c0_40] : memref<9x128x128xf32, #tpu.memory_space<vmem>>, vector<1x128x128xf32>
    %34 = vector.shape_cast %33 : vector<1x128x128xf32> to vector<128x128xf32>
    %cst_41 = arith.constant dense<0.000000e+00> : vector<128x128xf32>
    %35 = tpu.matmul %32, %34, %cst_41 {dimension_numbers = #tpu.dot_dimension_numbers<[1], [0], [0], [1], [0, 0, 1, 1], [], []>} : vector<128x128xf32>, vector<128x128xf32>, vector<128x128xf32> -> vector<128x128xf32>
    %36 = arith.addf %30, %35 : vector<128x128xf32>
    %c0_42 = arith.constant 0 : index
    %c2_43 = arith.constant 2 : index
    %c0_44 = arith.constant 0 : index
    %c0_45 = arith.constant 0 : index
    %37 = tpu.strided_load %arg1[%c0_42, %c2_43, %c0_44, %c0_45] {strides = array<i32: 1, 2, 2, 1>} : memref<2x17x24x128xf32, #tpu.memory_space<vmem>>, vector<2x8x8x128xf32>
    %38 = vector.shape_cast %37 : vector<2x8x8x128xf32> to vector<128x128xf32>
    %c6 = arith.constant 6 : index
    %c0_46 = arith.constant 0 : index
    %c0_47 = arith.constant 0 : index
    %39 = vector.load %arg2[%c6, %c0_46, %c0_47] : memref<9x128x128xf32, #tpu.memory_space<vmem>>, vector<1x128x128xf32>
    %40 = vector.shape_cast %39 : vector<1x128x128xf32> to vector<128x128xf32>
    %cst_48 = arith.constant dense<0.000000e+00> : vector<128x128xf32>
    %41 = tpu.matmul %38, %40, %cst_48 {dimension_numbers = #tpu.dot_dimension_numbers<[1], [0], [0], [1], [0, 0, 1, 1], [], []>} : vector<128x128xf32>, vector<128x128xf32>, vector<128x128xf32> -> vector<128x128xf32>
    %42 = arith.addf %36, %41 : vector<128x128xf32>
    %c0_49 = arith.constant 0 : index
    %c2_50 = arith.constant 2 : index
    %c1_51 = arith.constant 1 : index
    %c0_52 = arith.constant 0 : index
    %43 = tpu.strided_load %arg1[%c0_49, %c2_50, %c1_51, %c0_52] {strides = array<i32: 1, 2, 2, 1>} : memref<2x17x24x128xf32, #tpu.memory_space<vmem>>, vector<2x8x8x128xf32>
    %44 = vector.shape_cast %43 : vector<2x8x8x128xf32> to vector<128x128xf32>
    %c7 = arith.constant 7 : index
    %c0_53 = arith.constant 0 : index
    %c0_54 = arith.constant 0 : index
    %45 = vector.load %arg2[%c7, %c0_53, %c0_54] : memref<9x128x128xf32, #tpu.memory_space<vmem>>, vector<1x128x128xf32>
    %46 = vector.shape_cast %45 : vector<1x128x128xf32> to vector<128x128xf32>
    %cst_55 = arith.constant dense<0.000000e+00> : vector<128x128xf32>
    %47 = tpu.matmul %44, %46, %cst_55 {dimension_numbers = #tpu.dot_dimension_numbers<[1], [0], [0], [1], [0, 0, 1, 1], [], []>} : vector<128x128xf32>, vector<128x128xf32>, vector<128x128xf32> -> vector<128x128xf32>
    %48 = arith.addf %42, %47 : vector<128x128xf32>
    %c0_56 = arith.constant 0 : index
    %c2_57 = arith.constant 2 : index
    %c2_58 = arith.constant 2 : index
    %c0_59 = arith.constant 0 : index
    %49 = tpu.strided_load %arg1[%c0_56, %c2_57, %c2_58, %c0_59] {strides = array<i32: 1, 2, 2, 1>} : memref<2x17x24x128xf32, #tpu.memory_space<vmem>>, vector<2x8x8x128xf32>
    %50 = vector.shape_cast %49 : vector<2x8x8x128xf32> to vector<128x128xf32>
    %c8 = arith.constant 8 : index
    %c0_60 = arith.constant 0 : index
    %c0_61 = arith.constant 0 : index
    %51 = vector.load %arg2[%c8, %c0_60, %c0_61] : memref<9x128x128xf32, #tpu.memory_space<vmem>>, vector<1x128x128xf32>
    %52 = vector.shape_cast %51 : vector<1x128x128xf32> to vector<128x128xf32>
    %cst_62 = arith.constant dense<0.000000e+00> : vector<128x128xf32>
    %53 = tpu.matmul %50, %52, %cst_62 {dimension_numbers = #tpu.dot_dimension_numbers<[1], [0], [0], [1], [0, 0, 1, 1], [], []>} : vector<128x128xf32>, vector<128x128xf32>, vector<128x128xf32> -> vector<128x128xf32>
    %54 = arith.addf %48, %53 : vector<128x128xf32>
    %c0_63 = arith.constant 0 : index
    %c0_64 = arith.constant 0 : index
    %55 = vector.load %arg3[%c0_63, %c0_64] : memref<1x128xf32, #tpu.memory_space<vmem>>, vector<1x128xf32>
    %56 = vector.broadcast %55 : vector<1x128xf32> to vector<128x128xf32>
    %57 = arith.addf %54, %56 : vector<128x128xf32>
    %cst_65 = arith.constant 0.000000e+00 : f32
    %58 = vector.broadcast %cst_65 : f32 to vector<128x128xf32>
    %59 = arith.maximumf %57, %58 : vector<128x128xf32>
    %cst_66 = arith.constant 0.000000e+00 : f32
    %60 = vector.broadcast %cst_66 : f32 to vector<2x9x24x128xf32>
    %c0_67 = arith.constant 0 : index
    %c0_68 = arith.constant 0 : index
    %c0_69 = arith.constant 0 : index
    %c0_70 = arith.constant 0 : index
    %61 = vector.load %arg7[%c0_67, %c0_68, %c0_69, %c0_70] : memref<2x9x24x128xf32, #tpu.memory_space<vmem>>, vector<2x9x24x128xf32>
    tpu.vector_store %arg7[%c0_67, %c0_68, %c0_69, %c0_70], %60 {strides = array<i32>} : memref<2x9x24x128xf32, #tpu.memory_space<vmem>>, vector<2x9x24x128xf32>,
    %62 = vector.shape_cast %59 : vector<128x128xf32> to vector<2x8x8x128xf32>
    %c0_71 = arith.constant 0 : index
    %c0_72 = arith.constant 0 : index
    %c0_73 = arith.constant 0 : index
    %c0_74 = arith.constant 0 : index
    %63 = vector.load %arg7[%c0_71, %c0_72, %c0_73, %c0_74] : memref<2x9x24x128xf32, #tpu.memory_space<vmem>>, vector<2x8x8x128xf32>
    tpu.vector_store %arg7[%c0_71, %c0_72, %c0_73, %c0_74], %62 {strides = array<i32>} : memref<2x9x24x128xf32, #tpu.memory_space<vmem>>, vector<2x8x8x128xf32>,
    %cst_75 = arith.constant 0.000000e+00 : f32
    %64 = vector.broadcast %cst_75 : f32 to vector<64x128xf32>
    %c0_76 = arith.constant 0 : index
    %c0_77 = arith.constant 0 : index
    %c0_78 = arith.constant 0 : index
    %c0_79 = arith.constant 0 : index
    %65 = tpu.strided_load %arg7[%c0_76, %c0_77, %c0_78, %c0_79] {strides = array<i32: 1, 2, 2, 1>} : memref<2x9x24x128xf32, #tpu.memory_space<vmem>>, vector<2x4x8x128xf32>
    %66 = vector.shape_cast %65 : vector<2x4x8x128xf32> to vector<64x128xf32>
    %c0_80 = arith.constant 0 : index
    %c0_81 = arith.constant 0 : index
    %c0_82 = arith.constant 0 : index
    %67 = vector.load %arg4[%c0_80, %c0_81, %c0_82] : memref<9x128x128xf32, #tpu.memory_space<vmem>>, vector<1x128x128xf32>
    %68 = vector.shape_cast %67 : vector<1x128x128xf32> to vector<128x128xf32>
    %cst_83 = arith.constant dense<0.000000e+00> : vector<64x128xf32>
    %69 = tpu.matmul %66, %68, %cst_83 {dimension_numbers = #tpu.dot_dimension_numbers<[1], [0], [0], [1], [0, 0, 1, 1], [], []>} : vector<64x128xf32>, vector<128x128xf32>, vector<64x128xf32> -> vector<64x128xf32>
    %70 = arith.addf %64, %69 : vector<64x128xf32>
    %c0_84 = arith.constant 0 : index
    %c0_85 = arith.constant 0 : index
    %c1_86 = arith.constant 1 : index
    %c0_87 = arith.constant 0 : index
    %71 = tpu.strided_load %arg7[%c0_84, %c0_85, %c1_86, %c0_87] {strides = array<i32: 1, 2, 2, 1>} : memref<2x9x24x128xf32, #tpu.memory_space<vmem>>, vector<2x4x8x128xf32>
    %72 = vector.shape_cast %71 : vector<2x4x8x128xf32> to vector<64x128xf32>
    %c1_88 = arith.constant 1 : index
    %c0_89 = arith.constant 0 : index
    %c0_90 = arith.constant 0 : index
    %73 = vector.load %arg4[%c1_88, %c0_89, %c0_90] : memref<9x128x128xf32, #tpu.memory_space<vmem>>, vector<1x128x128xf32>
    %74 = vector.shape_cast %73 : vector<1x128x128xf32> to vector<128x128xf32>
    %cst_91 = arith.constant dense<0.000000e+00> : vector<64x128xf32>
    %75 = tpu.matmul %72, %74, %cst_91 {dimension_numbers = #tpu.dot_dimension_numbers<[1], [0], [0], [1], [0, 0, 1, 1], [], []>} : vector<64x128xf32>, vector<128x128xf32>, vector<64x128xf32> -> vector<64x128xf32>
    %76 = arith.addf %70, %75 : vector<64x128xf32>
    %c0_92 = arith.constant 0 : index
    %c0_93 = arith.constant 0 : index
    %c2_94 = arith.constant 2 : index
    %c0_95 = arith.constant 0 : index
    %77 = tpu.strided_load %arg7[%c0_92, %c0_93, %c2_94, %c0_95] {strides = array<i32: 1, 2, 2, 1>} : memref<2x9x24x128xf32, #tpu.memory_space<vmem>>, vector<2x4x8x128xf32>
    %78 = vector.shape_cast %77 : vector<2x4x8x128xf32> to vector<64x128xf32>
    %c2_96 = arith.constant 2 : index
    %c0_97 = arith.constant 0 : index
    %c0_98 = arith.constant 0 : index
    %79 = vector.load %arg4[%c2_96, %c0_97, %c0_98] : memref<9x128x128xf32, #tpu.memory_space<vmem>>, vector<1x128x128xf32>
    %80 = vector.shape_cast %79 : vector<1x128x128xf32> to vector<128x128xf32>
    %cst_99 = arith.constant dense<0.000000e+00> : vector<64x128xf32>
    %81 = tpu.matmul %78, %80, %cst_99 {dimension_numbers = #tpu.dot_dimension_numbers<[1], [0], [0], [1], [0, 0, 1, 1], [], []>} : vector<64x128xf32>, vector<128x128xf32>, vector<64x128xf32> -> vector<64x128xf32>
    %82 = arith.addf %76, %81 : vector<64x128xf32>
    %c0_100 = arith.constant 0 : index
    %c1_101 = arith.constant 1 : index
    %c0_102 = arith.constant 0 : index
    %c0_103 = arith.constant 0 : index
    %83 = tpu.strided_load %arg7[%c0_100, %c1_101, %c0_102, %c0_103] {strides = array<i32: 1, 2, 2, 1>} : memref<2x9x24x128xf32, #tpu.memory_space<vmem>>, vector<2x4x8x128xf32>
    %84 = vector.shape_cast %83 : vector<2x4x8x128xf32> to vector<64x128xf32>
    %c3_104 = arith.constant 3 : index
    %c0_105 = arith.constant 0 : index
    %c0_106 = arith.constant 0 : index
    %85 = vector.load %arg4[%c3_104, %c0_105, %c0_106] : memref<9x128x128xf32, #tpu.memory_space<vmem>>, vector<1x128x128xf32>
    %86 = vector.shape_cast %85 : vector<1x128x128xf32> to vector<128x128xf32>
    %cst_107 = arith.constant dense<0.000000e+00> : vector<64x128xf32>
    %87 = tpu.matmul %84, %86, %cst_107 {dimension_numbers = #tpu.dot_dimension_numbers<[1], [0], [0], [1], [0, 0, 1, 1], [], []>} : vector<64x128xf32>, vector<128x128xf32>, vector<64x128xf32> -> vector<64x128xf32>
    %88 = arith.addf %82, %87 : vector<64x128xf32>
    %c0_108 = arith.constant 0 : index
    %c1_109 = arith.constant 1 : index
    %c1_110 = arith.constant 1 : index
    %c0_111 = arith.constant 0 : index
    %89 = tpu.strided_load %arg7[%c0_108, %c1_109, %c1_110, %c0_111] {strides = array<i32: 1, 2, 2, 1>} : memref<2x9x24x128xf32, #tpu.memory_space<vmem>>, vector<2x4x8x128xf32>
    %90 = vector.shape_cast %89 : vector<2x4x8x128xf32> to vector<64x128xf32>
    %c4_112 = arith.constant 4 : index
    %c0_113 = arith.constant 0 : index
    %c0_114 = arith.constant 0 : index
    %91 = vector.load %arg4[%c4_112, %c0_113, %c0_114] : memref<9x128x128xf32, #tpu.memory_space<vmem>>, vector<1x128x128xf32>
    %92 = vector.shape_cast %91 : vector<1x128x128xf32> to vector<128x128xf32>
    %cst_115 = arith.constant dense<0.000000e+00> : vector<64x128xf32>
    %93 = tpu.matmul %90, %92, %cst_115 {dimension_numbers = #tpu.dot_dimension_numbers<[1], [0], [0], [1], [0, 0, 1, 1], [], []>} : vector<64x128xf32>, vector<128x128xf32>, vector<64x128xf32> -> vector<64x128xf32>
    %94 = arith.addf %88, %93 : vector<64x128xf32>
    %c0_116 = arith.constant 0 : index
    %c1_117 = arith.constant 1 : index
    %c2_118 = arith.constant 2 : index
    %c0_119 = arith.constant 0 : index
    %95 = tpu.strided_load %arg7[%c0_116, %c1_117, %c2_118, %c0_119] {strides = array<i32: 1, 2, 2, 1>} : memref<2x9x24x128xf32, #tpu.memory_space<vmem>>, vector<2x4x8x128xf32>
    %96 = vector.shape_cast %95 : vector<2x4x8x128xf32> to vector<64x128xf32>
    %c5_120 = arith.constant 5 : index
    %c0_121 = arith.constant 0 : index
    %c0_122 = arith.constant 0 : index
    %97 = vector.load %arg4[%c5_120, %c0_121, %c0_122] : memref<9x128x128xf32, #tpu.memory_space<vmem>>, vector<1x128x128xf32>
    %98 = vector.shape_cast %97 : vector<1x128x128xf32> to vector<128x128xf32>
    %cst_123 = arith.constant dense<0.000000e+00> : vector<64x128xf32>
    %99 = tpu.matmul %96, %98, %cst_123 {dimension_numbers = #tpu.dot_dimension_numbers<[1], [0], [0], [1], [0, 0, 1, 1], [], []>} : vector<64x128xf32>, vector<128x128xf32>, vector<64x128xf32> -> vector<64x128xf32>
    %100 = arith.addf %94, %99 : vector<64x128xf32>
    %c0_124 = arith.constant 0 : index
    %c2_125 = arith.constant 2 : index
    %c0_126 = arith.constant 0 : index
    %c0_127 = arith.constant 0 : index
    %101 = tpu.strided_load %arg7[%c0_124, %c2_125, %c0_126, %c0_127] {strides = array<i32: 1, 2, 2, 1>} : memref<2x9x24x128xf32, #tpu.memory_space<vmem>>, vector<2x4x8x128xf32>
    %102 = vector.shape_cast %101 : vector<2x4x8x128xf32> to vector<64x128xf32>
    %c6_128 = arith.constant 6 : index
    %c0_129 = arith.constant 0 : index
    %c0_130 = arith.constant 0 : index
    %103 = vector.load %arg4[%c6_128, %c0_129, %c0_130] : memref<9x128x128xf32, #tpu.memory_space<vmem>>, vector<1x128x128xf32>
    %104 = vector.shape_cast %103 : vector<1x128x128xf32> to vector<128x128xf32>
    %cst_131 = arith.constant dense<0.000000e+00> : vector<64x128xf32>
    %105 = tpu.matmul %102, %104, %cst_131 {dimension_numbers = #tpu.dot_dimension_numbers<[1], [0], [0], [1], [0, 0, 1, 1], [], []>} : vector<64x128xf32>, vector<128x128xf32>, vector<64x128xf32> -> vector<64x128xf32>
    %106 = arith.addf %100, %105 : vector<64x128xf32>
    %c0_132 = arith.constant 0 : index
    %c2_133 = arith.constant 2 : index
    %c1_134 = arith.constant 1 : index
    %c0_135 = arith.constant 0 : index
    %107 = tpu.strided_load %arg7[%c0_132, %c2_133, %c1_134, %c0_135] {strides = array<i32: 1, 2, 2, 1>} : memref<2x9x24x128xf32, #tpu.memory_space<vmem>>, vector<2x4x8x128xf32>
    %108 = vector.shape_cast %107 : vector<2x4x8x128xf32> to vector<64x128xf32>
    %c7_136 = arith.constant 7 : index
    %c0_137 = arith.constant 0 : index
    %c0_138 = arith.constant 0 : index
    %109 = vector.load %arg4[%c7_136, %c0_137, %c0_138] : memref<9x128x128xf32, #tpu.memory_space<vmem>>, vector<1x128x128xf32>
    %110 = vector.shape_cast %109 : vector<1x128x128xf32> to vector<128x128xf32>
    %cst_139 = arith.constant dense<0.000000e+00> : vector<64x128xf32>
    %111 = tpu.matmul %108, %110, %cst_139 {dimension_numbers = #tpu.dot_dimension_numbers<[1], [0], [0], [1], [0, 0, 1, 1], [], []>} : vector<64x128xf32>, vector<128x128xf32>, vector<64x128xf32> -> vector<64x128xf32>
    %112 = arith.addf %106, %111 : vector<64x128xf32>
    %c0_140 = arith.constant 0 : index
    %c2_141 = arith.constant 2 : index
    %c2_142 = arith.constant 2 : index
    %c0_143 = arith.constant 0 : index
    %113 = tpu.strided_load %arg7[%c0_140, %c2_141, %c2_142, %c0_143] {strides = array<i32: 1, 2, 2, 1>} : memref<2x9x24x128xf32, #tpu.memory_space<vmem>>, vector<2x4x8x128xf32>
    %114 = vector.shape_cast %113 : vector<2x4x8x128xf32> to vector<64x128xf32>
    %c8_144 = arith.constant 8 : index
    %c0_145 = arith.constant 0 : index
    %c0_146 = arith.constant 0 : index
    %115 = vector.load %arg4[%c8_144, %c0_145, %c0_146] : memref<9x128x128xf32, #tpu.memory_space<vmem>>, vector<1x128x128xf32>
    %116 = vector.shape_cast %115 : vector<1x128x128xf32> to vector<128x128xf32>
    %cst_147 = arith.constant dense<0.000000e+00> : vector<64x128xf32>
    %117 = tpu.matmul %114, %116, %cst_147 {dimension_numbers = #tpu.dot_dimension_numbers<[1], [0], [0], [1], [0, 0, 1, 1], [], []>} : vector<64x128xf32>, vector<128x128xf32>, vector<64x128xf32> -> vector<64x128xf32>
    %118 = arith.addf %112, %117 : vector<64x128xf32>
    %c0_148 = arith.constant 0 : index
    %c0_149 = arith.constant 0 : index
    %119 = vector.load %arg5[%c0_148, %c0_149] : memref<1x128xf32, #tpu.memory_space<vmem>>, vector<1x128xf32>
    %120 = vector.broadcast %119 : vector<1x128xf32> to vector<64x128xf32>
    %121 = arith.addf %118, %120 : vector<64x128xf32>
    %cst_150 = arith.constant 0.000000e+00 : f32
    %122 = vector.broadcast %cst_150 : f32 to vector<64x128xf32>
    %123 = arith.maximumf %121, %122 : vector<64x128xf32>
    %124 = vector.shape_cast %123 : vector<64x128xf32> to vector<2x4x8x128xf32>
    %c0_151 = arith.constant 0 : index
    %c0_152 = arith.constant 0 : index
    %c0_153 = arith.constant 0 : index
    %c0_154 = arith.constant 0 : index
    %125 = vector.load %arg6[%c0_151, %c0_152, %c0_153, %c0_154] : memref<2x4x8x128xf32, #tpu.memory_space<vmem>>, vector<2x4x8x128xf32>
    tpu.vector_store %arg6[%c0_151, %c0_152, %c0_153, %c0_154], %124 {strides = array<i32>} : memref<2x4x8x128xf32, #tpu.memory_space<vmem>>, vector<2x4x8x128xf32>,
    return
  }
  func.func @transform_0(%arg0: i32) -> (i32, i32, i32, i32) {
    %c0_i32 = arith.constant 0 : i32
    %c0_i32_0 = arith.constant 0 : i32
    %c0_i32_1 = arith.constant 0 : i32
    %c0_i32_2 = arith.constant 0 : i32
    %c0_i32_3 = arith.constant 0 : i32
    return %c0_i32, %c0_i32_0, %c0_i32_1, %c0_i32_2 : i32, i32, i32, i32
  }
  func.func @transform_1(%arg0: i32) -> (i32, i32, i32) {
    %c0_i32 = arith.constant 0 : i32
    %c0_i32_0 = arith.constant 0 : i32
    %c0_i32_1 = arith.constant 0 : i32
    %c0_i32_2 = arith.constant 0 : i32
    return %c0_i32, %c0_i32_0, %c0_i32_1 : i32, i32, i32
  }
  func.func @transform_2(%arg0: i32) -> (i32, i32) {
    %c0_i32 = arith.constant 0 : i32
    %c0_i32_0 = arith.constant 0 : i32
    %c0_i32_1 = arith.constant 0 : i32
    return %c0_i32, %c0_i32_0 : i32, i32
  }
  func.func @transform_3(%arg0: i32) -> (i32, i32, i32) {
    %c0_i32 = arith.constant 0 : i32
    %c0_i32_0 = arith.constant 0 : i32
    %c0_i32_1 = arith.constant 0 : i32
    %c0_i32_2 = arith.constant 0 : i32
    return %c0_i32, %c0_i32_0, %c0_i32_1 : i32, i32, i32
  }
  func.func @transform_4(%arg0: i32) -> (i32, i32) {
    %c0_i32 = arith.constant 0 : i32
    %c0_i32_0 = arith.constant 0 : i32
    %c0_i32_1 = arith.constant 0 : i32
    return %c0_i32, %c0_i32_0 : i32, i32
  }
  func.func @transform_5(%arg0: i32) -> (i32, i32, i32, i32) {
    %c0_i32 = arith.constant 0 : i32
    %c0_i32_0 = arith.constant 0 : i32
    %c0_i32_1 = arith.constant 0 : i32
    %c0_i32_2 = arith.constant 0 : i32
    %c0_i32_3 = arith.constant 0 : i32
    return %c0_i32, %c0_i32_0, %c0_i32_1, %c0_i32_2 : i32, i32, i32, i32
  }
}

</mosaic_0001>

<bundles_post_ra>
// kernel: tpu_custom_call.1
= control target key start
LH: loop header
LB: loop body
LE: loop exit
PB: predicated region body
PF: predicated region fallthrough
CT: control target
= control target key end

     0   :  { %10 = vsyncpa [#allocation4], 0  ;;  %s2793_s0 = inlined_call_operand.hbm [shape: f32[2,17,24,128], index: 0, kind: input, shape index: {}]   ;;  %s2794_s1 = inlined_call_operand.hbm [shape: f32[9,128,128], index: 1, kind: input, shape index: {}]   ;;  %s2795_s2 = inlined_call_operand.vmem [shape: f32[1,128], index: 2, kind: input, shape index: {}]   ;;  %s2796_s3 = inlined_call_operand.hbm [shape: f32[9,128,128], index: 3, kind: input, shape index: {}]   ;;  %s2797_s4 = inlined_call_operand.vmem [shape: f32[1,128], index: 4, kind: input, shape index: {}]   ;;  %s2798_s5 = inlined_call_operand.hbm [shape: f32[2,4,8,128], index: 5, kind: output, shape index: {}]  }
   0x1   :  { %11 = vsyncpa [#allocation7], 0 }
   0x2   :  { %12 = vsyncpa [#allocation5], 0  ;;  %s30_s20 = sshll.u32 %s2794_s1, 4  ;;  %s2393_s21 = smov [#allocation6]   ;;  %s31_s20 = int_to_ptr.hbm [resolvable:$true] %s30_s20 }
   0x3   :  { %s32_s22 = sshll.u32 %s2393_s21, 4  ;;  %s17_s25 = sshll.u32 %s2793_s0, 4  ;;  %s33_s22 = int_to_ptr.vmem [resolvable:$true] %s32_s22  ;;  %s18_s25 = int_to_ptr.hbm [resolvable:$true] %s17_s25 }
   0x4   :  { %s2394_s26 = smov 128   ;;  %s2395_s27 = smov 8  }
   0x5   :  { %38 = dma.hbm_to_vmem [thread:$0]  %s31_s20, 18432, %s33_s22, [#allocation7], %s2394_s26, %s2394_s26, %s2395_s27  }
   0x6   :  { %s2396_s28 = smov [#allocation3]   ;;  %s45_s1 = sshll.u32 %s2796_s3, 4  ;;  %s46_s1 = int_to_ptr.hbm [resolvable:$true] %s45_s1 }
   0x7   :  { %s19_s29 = sshll.u32 %s2396_s28, 4  ;;  %s2397_s0 = smov [#allocation8]   ;;  %s20_s29 = int_to_ptr.vmem [resolvable:$true] %s19_s29 }
   0x8   :  { %25 = dma.hbm_to_vmem [thread:$0]  %s18_s25, 13056, %s20_s29, [#allocation4], %s2394_s26, %s2394_s26, %s2395_s27  }
   0x9   :  { %s47_s7 = sshll.u32 %s2397_s0, 4  ;;  %s48_s7 = int_to_ptr.vmem [resolvable:$true] %s47_s7 }
   0xa   :  { %53 = dma.hbm_to_vmem [thread:$0]  %s46_s1, 18432, %s48_s7, [#allocation7], %s2394_s26, %s2394_s26, %s2395_s27  }
   0xb   :  { %2387 = dma.done.wait [#allocation4], 13056  }
   0xc   :  { %2388 = vsyncadd [#allocation4], 4294954240 }
   0xd   :  { %2389 = dma.done.wait [#allocation7], 36864  }
   0xe   :  { %2390 = vsyncadd [#allocation7], 4294930432  ;;  %v163_v0 = vld [vmem:[#allocation6 + $0xf8] sm:$0xff]  ;;  %v162_v3 = vld [vmem:[#allocation6 + $0xf0] sm:$0xff]  ;;  %s2064_s13 = sshll.u32 %s2798_s5, 4  ;;  %s2065_s13 = int_to_ptr.hbm [resolvable:$true] %s2064_s13 }
   0xf   :  { %v114_v1 = vld [vmem:[#allocation6 + $0x78] sm:$0xff]  ;;  %164 = vmatpush.msra.mxu0 %v163_v0  ;;  %v113_v4 = vld [vmem:[#allocation6 + $0x70] sm:$0xff]  ;;  %v161_v7 = vld [vmem:[#allocation6 + $0xe8] sm:$0xff] }
  0x10   :  { %v342_v2 = vld [vmem:[#allocation6 + $0x178] sm:$0xff]  ;;  %229 = vmatpush.msra.mxu1 %v114_v1  ;;  %v341_v5 = vld [vmem:[#allocation6 + $0x170] sm:$0xff]  ;;  %v112_v8 = vld [vmem:[#allocation6 + $0x68] sm:$0xff] }
  0x11   :  { %343 = vmatpush.msra.mxu2 %v342_v2  ;;  %v472_v6 = vld [vmem:[#allocation6 + $0x1f8] sm:$0xff]  ;;  %165 = vmatpush.msra.mxu0 %v162_v3  ;;  %v340_v9 = vld [vmem:[#allocation6 + $0x168] sm:$0xff]  ;;  %v471_v10 = vld [vmem:[#allocation6 + $0x1f0] sm:$0xff] }
  0x12   :  { %230 = vmatpush.msra.mxu1 %v113_v4  ;;  %473 = vmatpush.msra.mxu3 %v472_v6  ;;  %v160_v11 = vld [vmem:[#allocation6 + $0xe0] sm:$0xff]  ;;  %v470_v14 = vld [vmem:[#allocation6 + $0x1e8] sm:$0xff]  ;;  %v159_v15 = vld [vmem:[#allocation6 + $0xd8] sm:$0xff] }
  0x13   :  { %344 = vmatpush.msra.mxu2 %v341_v5  ;;  %v111_v12 = vld [vmem:[#allocation6 + $0x60] sm:$0xff]  ;;  %166 = vmatpush.msra.mxu0 %v161_v7  ;;  %v110_v16 = vld [vmem:[#allocation6 + $0x58] sm:$0xff]  ;;  %v158_v19 = vld [vmem:[#allocation6 + $0xd0] sm:$0xff] }
  0x14   :  { %231 = vmatpush.msra.mxu1 %v112_v8  ;;  %v339_v13 = vld [vmem:[#allocation6 + $0x160] sm:$0xff]  ;;  %474 = vmatpush.msra.mxu3 %v471_v10  ;;  %v338_v17 = vld [vmem:[#allocation6 + $0x158] sm:$0xff]  ;;  %v109_v20 = vld [vmem:[#allocation6 + $0x50] sm:$0xff] }
  0x15   :  { %345 = vmatpush.msra.mxu2 %v340_v9  ;;  %167 = vmatpush.msra.mxu0 %v160_v11  ;;  %v469_v18 = vld [vmem:[#allocation6 + $0x1e0] sm:$0xff]  ;;  %v337_v21 = vld [vmem:[#allocation6 + $0x150] sm:$0xff]  ;;  %v468_v22 = vld [vmem:[#allocation6 + $0x1d8] sm:$0xff] }
  0x16   :  { %232 = vmatpush.msra.mxu1 %v111_v12  ;;  %475 = vmatpush.msra.mxu3 %v470_v14  ;;  %v157_v23 = vld [vmem:[#allocation6 + $0xc8] sm:$0xff]  ;;  %v467_v26 = vld [vmem:[#allocation6 + $0x1d0] sm:$0xff]  ;;  %v156_v27 = vld [vmem:[#allocation6 + $0xc0] sm:$0xff] }
  0x17   :  { %346 = vmatpush.msra.mxu2 %v339_v13  ;;  %168 = vmatpush.msra.mxu0 %v159_v15  ;;  %v108_v24 = vld [vmem:[#allocation6 + $0x48] sm:$0xff]  ;;  %v107_v28 = vld [vmem:[#allocation6 + $0x40] sm:$0xff]  ;;  %v155_v31 = vld [vmem:[#allocation6 + $0xb8] sm:$0xff] }
  0x18   :  { %233 = vmatpush.msra.mxu1 %v110_v16  ;;  %476 = vmatpush.msra.mxu3 %v469_v18  ;;  %v336_v25 = vld [vmem:[#allocation6 + $0x148] sm:$0xff]  ;;  %v335_v29 = vld [vmem:[#allocation6 + $0x140] sm:$0xff]  ;;  %v106_v32 = vld [vmem:[#allocation6 + $0x38] sm:$0xff] }
  0x19   :  { %347 = vmatpush.msra.mxu2 %v338_v17  ;;  %169 = vmatpush.msra.mxu0 %v158_v19  ;;  %v466_v30 = vld [vmem:[#allocation6 + $0x1c8] sm:$0xff]  ;;  %v334_v33 = vld [vmem:[#allocation6 + $0x138] sm:$0xff]  ;;  %v465_v34 = vld [vmem:[#allocation6 + $0x1c0] sm:$0xff] }
  0x1a   :  { %234 = vmatpush.msra.mxu1 %v109_v20  ;;  %477 = vmatpush.msra.mxu3 %v468_v22  ;;  %v154_v35 = vld [vmem:[#allocation6 + $0xb0] sm:$0xff]  ;;  %v464_v38 = vld [vmem:[#allocation6 + $0x1b8] sm:$0xff]  ;;  %v153_v39 = vld [vmem:[#allocation6 + $0xa8] sm:$0xff] }
  0x1b   :  { %348 = vmatpush.msra.mxu2 %v337_v21  ;;  %170 = vmatpush.msra.mxu0 %v157_v23  ;;  %v105_v36 = vld [vmem:[#allocation6 + $0x30] sm:$0xff]  ;;  %v104_v40 = vld [vmem:[#allocation6 + $0x28] sm:$0xff]  ;;  %v152_v43 = vld [vmem:[#allocation6 + $0xa0] sm:$0xff] }
  0x1c   :  { %235 = vmatpush.msra.mxu1 %v108_v24  ;;  %478 = vmatpush.msra.mxu3 %v467_v26  ;;  %v333_v37 = vld [vmem:[#allocation6 + $0x130] sm:$0xff]  ;;  %v332_v41 = vld [vmem:[#allocation6 + $0x128] sm:$0xff]  ;;  %v103_v44 = vld [vmem:[#allocation6 + $0x20] sm:$0xff] }
  0x1d   :  { %349 = vmatpush.msra.mxu2 %v336_v25  ;;  %171 = vmatpush.msra.mxu0 %v156_v27  ;;  %v463_v42 = vld [vmem:[#allocation6 + $0x1b0] sm:$0xff]  ;;  %v331_v45 = vld [vmem:[#allocation6 + $0x120] sm:$0xff]  ;;  %v462_v46 = vld [vmem:[#allocation6 + $0x1a8] sm:$0xff] }
  0x1e   :  { %236 = vmatpush.msra.mxu1 %v107_v28  ;;  %479 = vmatpush.msra.mxu3 %v466_v30  ;;  %v151_v47 = vld [vmem:[#allocation6 + $0x98] sm:$0xff]  ;;  %v461_v50 = vld [vmem:[#allocation6 + $0x1a0] sm:$0xff]  ;;  %v150_v51 = vld [vmem:[#allocation6 + $0x90] sm:$0xff] }
  0x1f   :  { %350 = vmatpush.msra.mxu2 %v335_v29  ;;  %172 = vmatpush.msra.mxu0 %v155_v31  ;;  %v102_v48 = vld [vmem:[#allocation6 + $0x18] sm:$0xff]  ;;  %v101_v52 = vld [vmem:[#allocation6 + $0x10] sm:$0xff]  ;;  %v149_v55 = vld [vmem:[#allocation6 + $0x88] sm:$0xff] }
  0x20   :  { %237 = vmatpush.msra.mxu1 %v106_v32  ;;  %480 = vmatpush.msra.mxu3 %v465_v34  ;;  %v330_v49 = vld [vmem:[#allocation6 + $0x118] sm:$0xff]  ;;  %v329_v53 = vld [vmem:[#allocation6 + $0x110] sm:$0xff]  ;;  %v100_v56 = vld [vmem:[#allocation6 + $0x8] sm:$0xff] }
  0x21   :  { %351 = vmatpush.msra.mxu2 %v334_v33  ;;  %173 = vmatpush.msra.mxu0 %v154_v35  ;;  %v460_v54 = vld [vmem:[#allocation6 + $0x198] sm:$0xff]  ;;  %v328_v57 = vld [vmem:[#allocation6 + $0x108] sm:$0xff]  ;;  %v459_v58 = vld [vmem:[#allocation6 + $0x190] sm:$0xff] }
  0x22   :  { %238 = vmatpush.msra.mxu1 %v105_v36  ;;  %481 = vmatpush.msra.mxu3 %v464_v38  ;;  %v148_v59 = vld [vmem:[#allocation6 + $0x80] sm:$0xff]  ;;  %v458_v62 = vld [vmem:[#allocation6 + $0x188] sm:$0xff]  ;;  %v116_v63 = vld [vmem:[#allocation3 + $0x1] ss:$2 sm:$0xff] }
  0x23   :  { %352 = vmatpush.msra.mxu2 %v333_v37  ;;  %174 = vmatpush.msra.mxu0 %v153_v39  ;;  %v99_v60 = vld [vmem:[#allocation6] sm:$0xff]  ;;  %v68_v0 = vld [vmem:[#allocation3] ss:$2 sm:$0xff]  ;;  %v600_v6 = vld [vmem:[#allocation6 + $0x268] sm:$0xff] }
  0x24   :  { %239 = vmatpush.msra.mxu1 %v104_v40  ;;  %482 = vmatpush.msra.mxu3 %v463_v42  ;;  %v327_v61 = vld [vmem:[#allocation6 + $0x100] sm:$0xff]  ;;  %v602_v2 = vld [vmem:[#allocation6 + $0x278] sm:$0xff]  ;;  %v425_v4 = vld [vmem:[#allocation3 + $0x18] ss:$2 sm:$0xff] }
  0x25   :  { %353 = vmatpush.msra.mxu2 %v332_v41  ;;  %175 = vmatpush.msra.mxu0 %v152_v43  ;;  %v295_v1 = vld [vmem:[#allocation3 + $0x2] ss:$2 sm:$0xff]  ;;  %v118_v8 = vld [vmem:[#allocation3 + $0x31] ss:$2 sm:$0xff]  ;;  %v297_v10 = vld [vmem:[#allocation3 + $0x32] ss:$2 sm:$0xff] }
  0x26   :  { %240 = vmatpush.msra.mxu1 %v103_v44  ;;  %483 = vmatpush.msra.mxu3 %v462_v46  ;;  %v457_v3 = vld [vmem:[#allocation6 + $0x180] sm:$0xff]  ;;  %v601_v5 = vld [vmem:[#allocation6 + $0x270] sm:$0xff]  ;;  %v598_v11 = vld [vmem:[#allocation6 + $0x258] sm:$0xff] }
  0x27   :  { %354 = vmatpush.msra.mxu2 %v331_v45  ;;  %176 = vmatpush.msra.mxu0 %v151_v47  ;;  %v599_v7 = vld [vmem:[#allocation6 + $0x260] sm:$0xff]  ;;  %v597_v13 = vld [vmem:[#allocation6 + $0x250] sm:$0xff]  ;;  %v596_v18 = vld [vmem:[#allocation6 + $0x248] sm:$0xff] }
  0x28   :  { %241 = vmatpush.msra.mxu1 %v102_v48  ;;  %484 = vmatpush.msra.mxu3 %v461_v50  ;;  %v70_v9 = vld [vmem:[#allocation3 + $0x30] ss:$2 sm:$0xff]  ;;  %v120_v14 = vld [vmem:[#allocation3 + $0x61] ss:$2 sm:$0xff]  ;;  %v72_v15 = vld [vmem:[#allocation3 + $0x60] ss:$2 sm:$0xff] }
  0x29   :  { %355 = vmatpush.msra.mxu2 %v330_v49  ;;  %177 = vmatpush.msra.mxu0 %v150_v51  ;;  %v427_v12 = vld [vmem:[#allocation3 + $0x48] ss:$2 sm:$0xff]  ;;  %v429_v17 = vld [vmem:[#allocation3 + $0x78] ss:$2 sm:$0xff]  ;;  %v122_v19 = vld [vmem:[#allocation3 + $0x91] ss:$2 sm:$0xff] }
  0x2a   :  { %242 = vmatpush.msra.mxu1 %v101_v52  ;;  %485 = vmatpush.msra.mxu3 %v460_v54  ;;  %v299_v16 = vld [vmem:[#allocation3 + $0x62] ss:$2 sm:$0xff]  ;;  %v301_v21 = vld [vmem:[#allocation3 + $0x92] ss:$2 sm:$0xff]  ;;  %v124_v24 = vld [vmem:[#allocation3 + $0xc1] ss:$2 sm:$0xff] }
  0x2b   :  { %356 = vmatpush.msra.mxu2 %v329_v53  ;;  %178 = vmatpush.msra.mxu0 %v149_v55  ;;  %v74_v20 = vld [vmem:[#allocation3 + $0x90] ss:$2 sm:$0xff]  ;;  %v76_v25 = vld [vmem:[#allocation3 + $0xc0] ss:$2 sm:$0xff]  ;;  %v126_v29 = vld [vmem:[#allocation3 + $0xf1] ss:$2 sm:$0xff] }
  0x2c   :  { %243 = vmatpush.msra.mxu1 %v100_v56  ;;  %486 = vmatpush.msra.mxu3 %v459_v58  ;;  %v431_v22 = vld [vmem:[#allocation3 + $0xa8] ss:$2 sm:$0xff]  ;;  %v433_v27 = vld [vmem:[#allocation3 + $0xd8] ss:$2 sm:$0xff]  ;;  %v128_v34 = vld [vmem:[#allocation3 + $0x121] ss:$2 sm:$0xff] }
  0x2d   :  { %357 = vmatpush.msra.mxu2 %v328_v57  ;;  %179 = vmatpush.msra.mxu0 %v148_v59  ;;  %v595_v23 = vld [vmem:[#allocation6 + $0x240] sm:$0xff]  ;;  %v594_v28 = vld [vmem:[#allocation6 + $0x238] sm:$0xff]  ;;  %v593_v33 = vld [vmem:[#allocation6 + $0x230] sm:$0xff] }
  0x2e   :  { %244 = vmatpush.msra.mxu1 %v99_v60  ;;  %487 = vmatpush.msra.mxu3 %v458_v62  ;;  %v303_v26 = vld [vmem:[#allocation3 + $0xc2] ss:$2 sm:$0xff]  ;;  %v305_v31 = vld [vmem:[#allocation3 + $0xf2] ss:$2 sm:$0xff]  ;;  %v130_v39 = vld [vmem:[#allocation3 + $0x151] ss:$2 sm:$0xff] }
  0x2f   :  { %358 = vmatpush.msra.mxu2 %v327_v61  ;;  %180 = vmatmul.f32.vlgmr.msra.gmra.mxu0 %v116_v63  ;;  %v78_v30 = vld [vmem:[#allocation3 + $0xf0] ss:$2 sm:$0xff]  ;;  %v80_v35 = vld [vmem:[#allocation3 + $0x120] ss:$2 sm:$0xff]  ;;  %v132_v44 = vld [vmem:[#allocation3 + $0x199] ss:$2 sm:$0xff] }
  0x30   :  { %245 = vmatmul.f32.vlgmr.msra.gmra.mxu1 %v68_v0  ;;  %359 = vmatmul.f32.vlgmr.msra.gmra.mxu2 %v295_v1  ;;  %v435_v32 = vld [vmem:[#allocation3 + $0x108] ss:$2 sm:$0xff]  ;;  %v437_v37 = vld [vmem:[#allocation3 + $0x138] ss:$2 sm:$0xff]  ;;  %v134_v56 = vld [vmem:[#allocation3 + $0x1c9] ss:$2 sm:$0xff] }
  0x31   :  { %603 = vmatpush.msrb.mxu0 %v602_v2  ;;  %488 = vmatpush.msra.mxu3 %v457_v3  ;;  %v307_v36 = vld [vmem:[#allocation3 + $0x122] ss:$2 sm:$0xff]  ;;  %v592_v38 = vld [vmem:[#allocation6 + $0x228] sm:$0xff] }
  0x32   :  { %489 = vmatmul.f32.vlgmr.msra.gmra.mxu3 %v425_v4  ;;  %v82_v40 = vld [vmem:[#allocation3 + $0x150] ss:$2 sm:$0xff]  ;;  %v590_v48 = vld [vmem:[#allocation6 + $0x218] sm:$0xff]  ;;  %v861_v51 = vld [vmem:[#allocation6 + $0x370] sm:$0xff] }
  0x33   :  { %604 = vmatpush.msrb.mxu0 %v601_v5  ;;  %v309_v41 = vld [vmem:[#allocation3 + $0x152] ss:$2 sm:$0xff]  ;;  %v862_v49 = vld [vmem:[#allocation6 + $0x378] sm:$0xff] }
  0x34   :  { %v439_v42 = vld [vmem:[#allocation3 + $0x168] ss:$2 sm:$0xff]  ;;  %v84_v45 = vld [vmem:[#allocation3 + $0x198] ss:$2 sm:$0xff]  ;;  %863 = vmatpush.msrb.mxu2 %v862_v49  ;;  %v142_v49 = vld [vmem:[#allocation3 + $0x289] ss:$2 sm:$0xff] }
  0x35   :  { %605 = vmatpush.msrb.mxu0 %v600_v6  ;;  %v591_v43 = vld [vmem:[#allocation6 + $0x220] sm:$0xff]  ;;  %v311_v46 = vld [vmem:[#allocation3 + $0x19a] ss:$2 sm:$0xff]  ;;  %v136_v6 = vld [vmem:[#allocation3 + $0x1f9] ss:$2 sm:$0xff] }
  0x36   :  { %v441_v47 = vld [vmem:[#allocation3 + $0x1b0] ss:$2 sm:$0xff]  ;;  %v732_v50 = vld [vmem:[#allocation6 + $0x2f8] sm:$0xff]  ;;  %864 = vmatpush.msrb.mxu2 %v861_v51  ;;  %v731_v53 = vld [vmem:[#allocation6 + $0x2f0] sm:$0xff] }
  0x37   :  { %606 = vmatpush.msrb.mxu0 %v599_v7  ;;  %v992_v52 = vld [vmem:[#allocation6 + $0x3f8] sm:$0xff]  ;;  %733 = vmatpush.msrb.mxu1 %v732_v50  ;;  %v860_v54 = vld [vmem:[#allocation6 + $0x368] sm:$0xff]  ;;  %v991_v55 = vld [vmem:[#allocation6 + $0x3f0] sm:$0xff] }
  0x38   :  { %183 = vmatmul.f32.gmra.mxu0 %v118_v8  ;;  %248 = vmatmul.f32.gmra.mxu1 %v70_v9  ;;  %v86_v57 = vld [vmem:[#allocation3 + $0x1c8] ss:$2 sm:$0xff]  ;;  %v730_v59 = vld [vmem:[#allocation6 + $0x2e8] sm:$0xff]  ;;  %v589_v63 = vld [vmem:[#allocation6 + $0x210] sm:$0xff] }
  0x39   :  { %362 = vmatmul.f32.gmra.mxu2 %v297_v10  ;;  %607 = vmatpush.msrb.mxu0 %v598_v11  ;;  %v313_v58 = vld [vmem:[#allocation3 + $0x1ca] ss:$2 sm:$0xff]  ;;  %v857_v4 = vld [vmem:[#allocation6 + $0x350] sm:$0xff] }
  0x3a   :  { %492 = vmatmul.f32.gmra.mxu3 %v427_v12  ;;  %734 = vmatpush.msrb.mxu1 %v731_v53  ;;  %v859_v60 = vld [vmem:[#allocation6 + $0x360] sm:$0xff]  ;;  %v990_v61 = vld [vmem:[#allocation6 + $0x3e8] sm:$0xff]  ;;  %v443_v62 = vld [vmem:[#allocation3 + $0x1e0] ss:$2 sm:$0xff] }
  0x3b   :  { %608 = vmatpush.msrb.mxu0 %v597_v13  ;;  %993 = vmatpush.msrb.mxu3 %v992_v52  ;;  %v729_v0 = vld [vmem:[#allocation6 + $0x2e0] sm:$0xff]  ;;  %v858_v1 = vld [vmem:[#allocation6 + $0x358] sm:$0xff]  ;;  %v88_v7 = vld [vmem:[#allocation3 + $0x1f8] ss:$2 sm:$0xff] }
  0x3c   :  { %865 = vmatpush.msrb.mxu2 %v860_v54  ;;  %735 = vmatpush.msrb.mxu1 %v730_v59  ;;  %v989_v2 = vld [vmem:[#allocation6 + $0x3e0] sm:$0xff]  ;;  %v728_v3 = vld [vmem:[#allocation6 + $0x2d8] sm:$0xff]  ;;  %v727_v9 = vld [vmem:[#allocation6 + $0x2d0] sm:$0xff] }
  0x3d   :  { %609 = vmatpush.msrb.mxu0 %v596_v18  ;;  %994 = vmatpush.msrb.mxu3 %v991_v55  ;;  %v988_v5 = vld [vmem:[#allocation6 + $0x3d8] sm:$0xff]  ;;  %v856_v10 = vld [vmem:[#allocation6 + $0x348] sm:$0xff]  ;;  %v987_v11 = vld [vmem:[#allocation6 + $0x3d0] sm:$0xff] }
  0x3e   :  { %866 = vmatpush.msrb.mxu2 %v859_v60  ;;  %736 = vmatpush.msrb.mxu1 %v729_v0  ;;  %v315_v8 = vld [vmem:[#allocation3 + $0x1fa] ss:$2 sm:$0xff]  ;;  %v321_v51 = vld [vmem:[#allocation3 + $0x28a] ss:$2 sm:$0xff] }
  0x3f   :  { %610 = vmatpush.msrb.mxu0 %v595_v23  ;;  %995 = vmatpush.msrb.mxu3 %v990_v61  ;;  %v445_v12 = vld [vmem:[#allocation3 + $0x210] ss:$2 sm:$0xff]  ;;  %v854_v18 = vld [vmem:[#allocation6 + $0x338] sm:$0xff] }
  0x40   :  { %186 = vmatmul.f32.gmra.mxu0 %v120_v14  ;;  %251 = vmatmul.f32.gmra.mxu1 %v72_v15  ;;  %v726_v13 = vld [vmem:[#allocation6 + $0x2c8] sm:$0xff]  ;;  %v855_v14 = vld [vmem:[#allocation6 + $0x340] sm:$0xff]  ;;  %v451_v55 = vld [vmem:[#allocation3 + $0x2a0] ss:$2 sm:$0xff] }
  0x41   :  { %365 = vmatmul.f32.gmra.mxu2 %v299_v16  ;;  %611 = vmatpush.msrb.mxu0 %v594_v28  ;;  %v986_v15 = vld [vmem:[#allocation6 + $0x3c8] sm:$0xff]  ;;  %v94_v50 = vld [vmem:[#allocation3 + $0x288] ss:$2 sm:$0xff] }
  0x42   :  { %495 = vmatmul.f32.gmra.mxu3 %v429_v17  ;;  %867 = vmatpush.msrb.mxu2 %v858_v1  ;;  %v588_v16 = vld [vmem:[#allocation6 + $0x208] sm:$0xff]  ;;  %v725_v17 = vld [vmem:[#allocation6 + $0x2c0] sm:$0xff] }
  0x43   :  { %612 = vmatpush.msrb.mxu0 %v593_v33  ;;  %996 = vmatpush.msrb.mxu3 %v989_v2  ;;  %v317_v23 = vld [vmem:[#allocation3 + $0x22a] ss:$2 sm:$0xff]  ;;  %v323_v60 = vld [vmem:[#allocation3 + $0x2ba] ss:$2 sm:$0xff] }
  0x44   :  { %737 = vmatpush.msrb.mxu1 %v728_v3  ;;  %868 = vmatpush.msrb.mxu2 %v857_v4  ;;  %v852_v28 = vld [vmem:[#allocation6 + $0x328] sm:$0xff]  ;;  %v847_v53 = vld [vmem:[#allocation6 + $0x300] sm:$0xff]  ;;  %v455_v2 = vld [vmem:[#allocation3 + $0x300] ss:$2 sm:$0xff] }
  0x45   :  { %613 = vmatpush.msrb.mxu0 %v592_v38  ;;  %997 = vmatpush.msrb.mxu3 %v988_v5  ;;  %v982_v33 = vld [vmem:[#allocation6 + $0x3a8] sm:$0xff]  ;;  %v981_v38 = vld [vmem:[#allocation6 + $0x3a0] sm:$0xff] }
  0x46   :  { %738 = vmatpush.msrb.mxu1 %v727_v9  ;;  %869 = vmatpush.msrb.mxu2 %v856_v10  ;;  %v978_v52 = vld [vmem:[#allocation6 + $0x388] sm:$0xff]  ;;  %v717_v54 = vld [vmem:[#allocation6 + $0x280] sm:$0xff]  ;;  %v1118_v10 = vld [vmem:[#allocation6 + $0x458] sm:$0xff] }
  0x47   :  { %614 = vmatpush.msrb.mxu0 %v591_v43  ;;  %998 = vmatpush.msrb.mxu3 %v987_v11  ;;  %v980_v43 = vld [vmem:[#allocation6 + $0x398] sm:$0xff]  ;;  %v96_v59 = vld [vmem:[#allocation3 + $0x2b8] ss:$2 sm:$0xff]  ;;  %v1119_v3 = vld [vmem:[#allocation6 + $0x460] sm:$0xff] }
  0x48   :  { %189 = vmatmul.f32.gmra.mxu0 %v122_v19  ;;  %254 = vmatmul.f32.gmra.mxu1 %v74_v20  ;;  %v985_v19 = vld [vmem:[#allocation6 + $0x3c0] sm:$0xff]  ;;  %v724_v20 = vld [vmem:[#allocation6 + $0x2b8] sm:$0xff] }
  0x49   :  { %368 = vmatmul.f32.gmra.mxu2 %v301_v21  ;;  %615 = vmatpush.msrb.mxu0 %v590_v48  ;;  %v138_v21 = vld [vmem:[#allocation3 + $0x229] ss:$2 sm:$0xff]  ;;  %v718_v48 = vld [vmem:[#allocation6 + $0x288] sm:$0xff]  ;;  %v98_v0 = vld [vmem:[#allocation3 + $0x2e8] ss:$2 sm:$0xff] }
  0x4a   :  { %498 = vmatmul.f32.gmra.mxu3 %v431_v22  ;;  %739 = vmatpush.msrb.mxu1 %v726_v13  ;;  %v90_v22 = vld [vmem:[#allocation3 + $0x228] ss:$2 sm:$0xff]  ;;  %v945_v9 = vld [vmem:[#allocation3 + $0x31] ss:$2 sm:$0xff] }
  0x4b   :  { %616 = vmatpush.msrb.mxu0 %v589_v63  ;;  %870 = vmatpush.msrb.mxu2 %v855_v14  ;;  %v453_v61 = vld [vmem:[#allocation3 + $0x2d0] ss:$2 sm:$0xff]  ;;  %v146_v63 = vld [vmem:[#allocation3 + $0x2e9] ss:$2 sm:$0xff] }
  0x4c   :  { %999 = vmatpush.msrb.mxu3 %v986_v15  ;;  %740 = vmatpush.msrb.mxu1 %v725_v17  ;;  %v325_v1 = vld [vmem:[#allocation3 + $0x2ea] ss:$2 sm:$0xff] }
  0x4d   :  { %617 = vmatpush.msrb.mxu0 %v588_v16  ;;  %871 = vmatpush.msrb.mxu2 %v854_v18  ;;  %v557_v16 = vld [vmem:[#allocation3 + $0x49] ss:$2 sm:$0xff]  ;;  %v687_v17 = vld [vmem:[#allocation3 + $0x4a] ss:$2 sm:$0xff] }
  0x4e   :  { %1000 = vmatpush.msrb.mxu3 %v985_v19  ;;  %741 = vmatpush.msrb.mxu1 %v724_v20  ;;  %v817_v19 = vld [vmem:[#allocation3 + $0x60] ss:$2 sm:$0xff] }
  0x50   :  { %192 = vmatmul.f32.gmra.mxu0 %v124_v24  ;;  %257 = vmatmul.f32.gmra.mxu1 %v76_v25  ;;  %v984_v24 = vld [vmem:[#allocation6 + $0x3b8] sm:$0xff]  ;;  %v853_v25 = vld [vmem:[#allocation6 + $0x330] sm:$0xff] }
  0x51   :  { %371 = vmatmul.f32.gmra.mxu2 %v303_v26  ;;  %v723_v26 = vld [vmem:[#allocation6 + $0x2b0] sm:$0xff]  ;;  %1001 = vmatpush.msrb.mxu3 %v984_v24 }
  0x52   :  { %501 = vmatmul.f32.gmra.mxu3 %v433_v27  ;;  %v447_v27 = vld [vmem:[#allocation3 + $0x240] ss:$2 sm:$0xff]  ;;  %872 = vmatpush.msrb.mxu2 %v853_v25 }
  0x53   :  { %742 = vmatpush.msrb.mxu1 %v723_v26 }
  0x54   :  { %873 = vmatpush.msrb.mxu2 %v852_v28  ;;  %v559_v28 = vld [vmem:[#allocation3 + $0x79] ss:$2 sm:$0xff] }
  0x58   :  { %195 = vmatmul.f32.gmra.mxu0 %v126_v29  ;;  %260 = vmatmul.f32.gmra.mxu1 %v78_v30  ;;  %v983_v29 = vld [vmem:[#allocation6 + $0x3b0] sm:$0xff]  ;;  %v587_v30 = vld [vmem:[#allocation6 + $0x200] sm:$0xff] }
  0x59   :  { %374 = vmatmul.f32.gmra.mxu2 %v305_v31  ;;  %v722_v31 = vld [vmem:[#allocation6 + $0x2a8] sm:$0xff]  ;;  %618 = vmatpush.msrb.mxu0 %v587_v30 }
  0x5a   :  { %504 = vmatmul.f32.gmra.mxu3 %v435_v32  ;;  %v851_v32 = vld [vmem:[#allocation6 + $0x320] sm:$0xff]  ;;  %743 = vmatpush.msrb.mxu1 %v722_v31 }
  0x5b   :  { %1002 = vmatpush.msrb.mxu3 %v983_v29  ;;  %874 = vmatpush.msrb.mxu2 %v851_v32  ;;  %v689_v29 = vld [vmem:[#allocation3 + $0x7a] ss:$2 sm:$0xff] }
  0x5c   :  { %v819_v31 = vld [vmem:[#allocation3 + $0x90] ss:$2 sm:$0xff] }
  0x5d   :  { %1003 = vmatpush.msrb.mxu3 %v982_v33  ;;  %v949_v33 = vld [vmem:[#allocation3 + $0x91] ss:$2 sm:$0xff] }
  0x5f   :  { %1004 = vmatpush.msrb.mxu3 %v981_v38 }
  0x60   :  { %198 = vmatmul.f32.gmra.mxu0 %v128_v34  ;;  %263 = vmatmul.f32.gmra.mxu1 %v80_v35  ;;  %v721_v34 = vld [vmem:[#allocation6 + $0x2a0] sm:$0xff]  ;;  %v140_v35 = vld [vmem:[#allocation3 + $0x259] ss:$2 sm:$0xff] }
  0x61   :  { %377 = vmatmul.f32.gmra.mxu2 %v307_v36  ;;  %v92_v36 = vld [vmem:[#allocation3 + $0x258] ss:$2 sm:$0xff]  ;;  %744 = vmatpush.msrb.mxu1 %v721_v34 }
  0x62   :  { %507 = vmatmul.f32.gmra.mxu3 %v437_v37  ;;  %v319_v37 = vld [vmem:[#allocation3 + $0x25a] ss:$2 sm:$0xff] }
  0x63   :  { %1005 = vmatpush.msrb.mxu3 %v980_v43  ;;  %v1116_v34 = vld [vmem:[#allocation6 + $0x448] sm:$0xff]  ;;  %v821_v43 = vld [vmem:[#allocation3 + $0xc0] ss:$2 sm:$0xff] }
  0x68   :  { %201 = vmatmul.f32.gmra.mxu0 %v130_v39  ;;  %266 = vmatmul.f32.gmra.mxu1 %v82_v40  ;;  %v850_v39 = vld [vmem:[#allocation6 + $0x318] sm:$0xff] }
  0x69   :  { %380 = vmatmul.f32.gmra.mxu2 %v309_v41  ;;  %v720_v40 = vld [vmem:[#allocation6 + $0x298] sm:$0xff]  ;;  %v449_v41 = vld [vmem:[#allocation3 + $0x270] ss:$2 sm:$0xff] }
  0x6a   :  { %510 = vmatmul.f32.gmra.mxu3 %v439_v42  ;;  %v849_v42 = vld [vmem:[#allocation6 + $0x310] sm:$0xff]  ;;  %875 = vmatpush.msrb.mxu2 %v850_v39 }
  0x6b   :  { %745 = vmatpush.msrb.mxu1 %v720_v40  ;;  %v561_v40 = vld [vmem:[#allocation3 + $0xa9] ss:$2 sm:$0xff] }
  0x6c   :  { %876 = vmatpush.msrb.mxu2 %v849_v42 }
  0x70   :  { %204 = vmatmul.f32.gmra.mxu0 %v132_v44  ;;  %269 = vmatmul.f32.gmra.mxu1 %v84_v45  ;;  %v1122_v44 = vld [vmem:[#allocation6 + $0x478] sm:$0xff]  ;;  %v719_v45 = vld [vmem:[#allocation6 + $0x290] sm:$0xff] }
  0x71   :  { %383 = vmatmul.f32.gmra.mxu2 %v311_v46  ;;  %v848_v46 = vld [vmem:[#allocation6 + $0x308] sm:$0xff]  ;;  %1123 = vmatpush.msra.mxu0 %v1122_v44 }
  0x72   :  { %513 = vmatmul.f32.gmra.mxu3 %v441_v47  ;;  %v979_v47 = vld [vmem:[#allocation6 + $0x390] sm:$0xff]  ;;  %746 = vmatpush.msrb.mxu1 %v719_v45 }
  0x73   :  { %877 = vmatpush.msrb.mxu2 %v848_v46  ;;  %1006 = vmatpush.msrb.mxu3 %v979_v47  ;;  %v951_v45 = vld [vmem:[#allocation3 + $0xc1] ss:$2 sm:$0xff]  ;;  %v1115_v46 = vld [vmem:[#allocation6 + $0x440] sm:$0xff] }
  0x74   :  { %747 = vmatpush.msrb.mxu1 %v718_v48 }
  0x75   :  { %1007 = vmatpush.msrb.mxu3 %v978_v52  ;;  %878 = vmatpush.msrb.mxu2 %v847_v53  ;;  %v563_v52 = vld [vmem:[#allocation3 + $0xd9] ss:$2 sm:$0xff]  ;;  %v693_v53 = vld [vmem:[#allocation3 + $0xda] ss:$2 sm:$0xff] }
  0x76   :  { %748 = vmatpush.msrb.mxu1 %v717_v54 }
  0x78   :  { %207 = vmatmul.f32.gmra.mxu0 %v134_v56  ;;  %272 = vmatmul.f32.gmra.mxu1 %v86_v57  ;;  %v977_v56 = vld [vmem:[#allocation6 + $0x380] sm:$0xff]  ;;  %v1121_v57 = vld [vmem:[#allocation6 + $0x470] sm:$0xff] }
  0x79   :  { %386 = vmatmul.f32.gmra.mxu2 %v313_v58  ;;  %1124 = vmatpush.msra.mxu0 %v1121_v57  ;;  %v144_v58 = vld [vmem:[#allocation3 + $0x2b9] ss:$2 sm:$0xff] }
  0x7a   :  { %516 = vmatmul.f32.gmra.mxu3 %v443_v62  ;;  %v1120_v62 = vld [vmem:[#allocation6 + $0x468] sm:$0xff] }
  0x7b   :  { %1008 = vmatpush.msrb.mxu3 %v977_v56  ;;  %1125 = vmatpush.msra.mxu0 %v1120_v62  ;;  %v953_v57 = vld [vmem:[#allocation3 + $0xf1] ss:$2 sm:$0xff] }
  0x7d   :  { %1126 = vmatpush.msra.mxu0 %v1119_v3  ;;  %v825_v3 = vld [vmem:[#allocation3 + $0x120] ss:$2 sm:$0xff] }
  0x7f   :  { %1127 = vmatpush.msra.mxu0 %v1118_v10 }
  0x80   :  { %210 = vmatmul.f32.gmra.mxu0 %v136_v6  ;;  %275 = vmatmul.f32.gmra.mxu1 %v88_v7  ;;  %v555_v6 = vld [vmem:[#allocation3 + $0x19] ss:$2 sm:$0xff]  ;;  %v685_v7 = vld [vmem:[#allocation3 + $0x1a] ss:$2 sm:$0xff] }
  0x81   :  { %389 = vmatmul.f32.gmra.mxu2 %v315_v8  ;;  %v815_v8 = vld [vmem:[#allocation3 + $0x30] ss:$2 sm:$0xff] }
  0x82   :  { %519 = vmatmul.f32.gmra.mxu3 %v445_v12 }
  0x88   :  { %213 = vmatmul.f32.gmra.mxu0 %v138_v21  ;;  %278 = vmatmul.f32.gmra.mxu1 %v90_v22  ;;  %v947_v21 = vld [vmem:[#allocation3 + $0x61] ss:$2 sm:$0xff] }
  0x89   :  { %392 = vmatmul.f32.gmra.mxu2 %v317_v23  ;;  %v1117_v22 = vld [vmem:[#allocation6 + $0x450] sm:$0xff] }
  0x8a   :  { %522 = vmatmul.f32.gmra.mxu3 %v447_v27  ;;  %1128 = vmatpush.msra.mxu0 %v1117_v22 }
  0x8c   :  { %1129 = vmatpush.msra.mxu0 %v1116_v34 }
  0x8e   :  { %1130 = vmatpush.msra.mxu0 %v1115_v46  ;;  %v573_v46 = vld [vmem:[#allocation3 + $0x1e1] ss:$2 sm:$0xff] }
  0x90   :  { %216 = vmatmul.f32.gmra.mxu0 %v140_v35  ;;  %281 = vmatmul.f32.gmra.mxu1 %v92_v36 }
  0x91   :  { %395 = vmatmul.f32.gmra.mxu2 %v319_v37 }
  0x92   :  { %525 = vmatmul.f32.gmra.mxu3 %v449_v41  ;;  %v691_v41 = vld [vmem:[#allocation3 + $0xaa] ss:$2 sm:$0xff] }
  0x98   :  { %219 = vmatmul.f32.gmra.mxu0 %v142_v49  ;;  %284 = vmatmul.f32.gmra.mxu1 %v94_v50 }
  0x99   :  { %398 = vmatmul.f32.gmra.mxu2 %v321_v51 }
  0x9a   :  { %528 = vmatmul.f32.gmra.mxu3 %v451_v55  ;;  %v823_v55 = vld [vmem:[#allocation3 + $0xf0] ss:$2 sm:$0xff] }
  0xa0   :  { %222 = vmatmul.f32.gmra.mxu0 %v144_v58  ;;  %287 = vmatmul.f32.gmra.mxu1 %v96_v59  ;;  %v1114_v58 = vld [vmem:[#allocation6 + $0x438] sm:$0xff] }
  0xa1   :  { %401 = vmatmul.f32.gmra.mxu2 %v323_v60  ;;  %1131 = vmatpush.msra.mxu0 %v1114_v58 }
  0xa2   :  { %531 = vmatmul.f32.gmra.mxu3 %v453_v61 }
  0xa8   :  { %225 = vmatmul.f32.gmra.mxu0 %v146_v63  ;;  %290 = vmatmul.f32.gmra.mxu1 %v98_v0  ;;  %v565_v0 = vld [vmem:[#allocation3 + $0x109] ss:$2 sm:$0xff] }
  0xa9   :  { %404 = vmatmul.f32.gmra.mxu2 %v325_v1  ;;  %v695_v1 = vld [vmem:[#allocation3 + $0x10a] ss:$2 sm:$0xff] }
  0xaa   :  { %534 = vmatmul.f32.gmra.mxu3 %v455_v2 }
  0xac   :  { %v181_v4 = vpop.f32.mrf.mxu0 }
  0xad   :  { %v246_v5 = vpop.f32.mrf.mxu1 }
  0xae   :  { %v247_v11 = vadd.f32 %v246_v5, %v181_v4  ;;  %v955_v5 = vld [vmem:[#allocation3 + $0x121] ss:$2 sm:$0xff] }
  0xb0   :  { %619 = vmatmul.f32.vlgmr.msrb.gmra.mxu0 %v555_v6  ;;  %749 = vmatmul.f32.vlgmr.msrb.gmra.mxu1 %v685_v7  ;;  %v1113_v6 = vld [vmem:[#allocation6 + $0x430] sm:$0xff] }
  0xb1   :  { %879 = vmatmul.f32.vlgmr.msrb.gmra.mxu2 %v815_v8  ;;  %1132 = vmatpush.msra.mxu0 %v1113_v6 }
  0xb2   :  { %1009 = vmatmul.f32.vlgmr.msrb.gmra.mxu3 %v945_v9 }
  0xb3   :  { %v360_v12 = vpop.f32.mrf.mxu2 }
  0xb4   :  { %v408_v13 = vadd.f32 %v360_v12, %v247_v11  ;;  %v567_v11 = vld [vmem:[#allocation3 + $0x139] ss:$2 sm:$0xff]  ;;  %v697_v12 = vld [vmem:[#allocation3 + $0x13a] ss:$2 sm:$0xff] }
  0xb5   :  { %v184_v14 = vpop.f32.mrf.mxu0  ;;  %v249_v15 = vpop.f32.mrf.mxu1 }
  0xb6   :  { %v490_v18 = vpop.f32.mrf.mxu3  ;;  %v250_v23 = vadd.f32 %v249_v15, %v184_v14  ;;  %v827_v15 = vld [vmem:[#allocation3 + $0x150] ss:$2 sm:$0xff] }
  0xb7   :  { %v2448_v20 = vadd.f32 %v490_v18, %v408_v13  ;;  %v1112_v18 = vld [vmem:[#allocation6 + $0x428] sm:$0xff] }
  0xb8   :  { %622 = vmatmul.f32.gmra.mxu0 %v557_v16  ;;  %752 = vmatmul.f32.gmra.mxu1 %v687_v17  ;;  %v957_v17 = vld [vmem:[#allocation3 + $0x151] ss:$2 sm:$0xff] }
  0xb9   :  { %882 = vmatmul.f32.gmra.mxu2 %v817_v19  ;;  %1133 = vmatpush.msra.mxu0 %v1112_v18  ;;  %v585_v18 = vld [vmem:[#allocation3 + $0x301] ss:$2 sm:$0xff] }
  0xba   :  { %1012 = vmatmul.f32.gmra.mxu3 %v947_v21 }
  0xbc   :  { %v363_v24 = vpop.f32.mrf.mxu2 }
  0xbd   :  { %v409_v25 = vadd.f32 %v363_v24, %v250_v23  ;;  %v187_v26 = vpop.f32.mrf.mxu0  ;;  %v252_v27 = vpop.f32.mrf.mxu1  ;;  %v569_v24 = vld [vmem:[#allocation3 + $0x169] ss:$2 sm:$0xff] }
  0xbe   :  { %v493_v30 = vpop.f32.mrf.mxu3  ;;  %v253_v35 = vadd.f32 %v252_v27, %v187_v26  ;;  %v829_v27 = vld [vmem:[#allocation3 + $0x180] ss:$2 sm:$0xff] }
  0xbf   :  { %v2450_v32 = vadd.f32 %v493_v30, %v409_v25  ;;  %v699_v25 = vld [vmem:[#allocation3 + $0x16a] ss:$2 sm:$0xff]  ;;  %v959_v30 = vld [vmem:[#allocation3 + $0x181] ss:$2 sm:$0xff] }
  0xc0   :  { %625 = vmatmul.f32.gmra.mxu0 %v559_v28  ;;  %755 = vmatmul.f32.gmra.mxu1 %v689_v29 }
  0xc1   :  { %885 = vmatmul.f32.gmra.mxu2 %v819_v31  ;;  %v1111_v31 = vld [vmem:[#allocation6 + $0x420] sm:$0xff] }
  0xc2   :  { %1015 = vmatmul.f32.gmra.mxu3 %v949_v33  ;;  %1134 = vmatpush.msra.mxu0 %v1111_v31 }
  0xc4   :  { %v366_v36 = vpop.f32.mrf.mxu2 }
  0xc5   :  { %v410_v37 = vadd.f32 %v366_v36, %v253_v35  ;;  %v190_v38 = vpop.f32.mrf.mxu0  ;;  %v255_v39 = vpop.f32.mrf.mxu1 }
  0xc6   :  { %v496_v42 = vpop.f32.mrf.mxu3  ;;  %v256_v47 = vadd.f32 %v255_v39, %v190_v38  ;;  %v701_v38 = vld [vmem:[#allocation3 + $0x1b2] ss:$2 sm:$0xff] }
  0xc7   :  { %v2452_v44 = vadd.f32 %v496_v42, %v410_v37  ;;  %v571_v37 = vld [vmem:[#allocation3 + $0x1b1] ss:$2 sm:$0xff] }
  0xc8   :  { %628 = vmatmul.f32.gmra.mxu0 %v561_v40  ;;  %758 = vmatmul.f32.gmra.mxu1 %v691_v41  ;;  %v831_v40 = vld [vmem:[#allocation3 + $0x1c8] ss:$2 sm:$0xff]  ;;  %v961_v42 = vld [vmem:[#allocation3 + $0x1c9] ss:$2 sm:$0xff] }
  0xc9   :  { %888 = vmatmul.f32.gmra.mxu2 %v821_v43  ;;  %v1110_v43 = vld [vmem:[#allocation6 + $0x418] sm:$0xff] }
  0xca   :  { %1018 = vmatmul.f32.gmra.mxu3 %v951_v45  ;;  %1135 = vmatpush.msra.mxu0 %v1110_v43 }
  0xcc   :  { %v369_v48 = vpop.f32.mrf.mxu2 }
  0xcd   :  { %v411_v49 = vadd.f32 %v369_v48, %v256_v47  ;;  %v193_v50 = vpop.f32.mrf.mxu0  ;;  %v258_v51 = vpop.f32.mrf.mxu1  ;;  %v703_v47 = vld [vmem:[#allocation3 + $0x1e2] ss:$2 sm:$0xff] }
  0xce   :  { %v499_v54 = vpop.f32.mrf.mxu3  ;;  %v259_v59 = vadd.f32 %v258_v51, %v193_v50  ;;  %v833_v48 = vld [vmem:[#allocation3 + $0x1f8] ss:$2 sm:$0xff] }
  0xcf   :  { %v2454_v56 = vadd.f32 %v499_v54, %v411_v49  ;;  %v963_v49 = vld [vmem:[#allocation3 + $0x1f9] ss:$2 sm:$0xff]  ;;  %v835_v54 = vld [vmem:[#allocation3 + $0x228] ss:$2 sm:$0xff] }
  0xd0   :  { %631 = vmatmul.f32.gmra.mxu0 %v563_v52  ;;  %761 = vmatmul.f32.gmra.mxu1 %v693_v53  ;;  %v1109_v50 = vld [vmem:[#allocation6 + $0x410] sm:$0xff]  ;;  %v575_v52 = vld [vmem:[#allocation3 + $0x211] ss:$2 sm:$0xff] }
  0xd1   :  { %891 = vmatmul.f32.gmra.mxu2 %v823_v55  ;;  %1136 = vmatpush.msra.mxu0 %v1109_v50  ;;  %v705_v53 = vld [vmem:[#allocation3 + $0x212] ss:$2 sm:$0xff]  ;;  %v965_v55 = vld [vmem:[#allocation3 + $0x229] ss:$2 sm:$0xff] }
  0xd2   :  { %1021 = vmatmul.f32.gmra.mxu3 %v953_v57  ;;  %v1108_v57 = vld [vmem:[#allocation6 + $0x408] sm:$0xff] }
  0xd3   :  { %1137 = vmatpush.msra.mxu0 %v1108_v57 }
  0xd4   :  { %v372_v60 = vpop.f32.mrf.mxu2 }
  0xd5   :  { %v412_v61 = vadd.f32 %v372_v60, %v259_v59  ;;  %v196_v62 = vpop.f32.mrf.mxu0  ;;  %v261_v63 = vpop.f32.mrf.mxu1  ;;  %v577_v59 = vld [vmem:[#allocation3 + $0x241] ss:$2 sm:$0xff]  ;;  %v707_v60 = vld [vmem:[#allocation3 + $0x242] ss:$2 sm:$0xff] }
  0xd6   :  { %v502_v2 = vpop.f32.mrf.mxu3  ;;  %v262_v7 = vadd.f32 %v261_v63, %v196_v62  ;;  %v967_v62 = vld [vmem:[#allocation3 + $0x259] ss:$2 sm:$0xff]  ;;  %v1107_v63 = vld [vmem:[#allocation6 + $0x400] sm:$0xff] }
  0xd7   :  { %v2456_v4 = vadd.f32 %v502_v2, %v412_v61  ;;  %v837_v61 = vld [vmem:[#allocation3 + $0x258] ss:$2 sm:$0xff]  ;;  %1138 = vmatpush.msra.mxu0 %v1107_v63 }
  0xd8   :  { %634 = vmatmul.f32.gmra.mxu0 %v565_v0  ;;  %764 = vmatmul.f32.gmra.mxu1 %v695_v1  ;;  %v579_v1 = vld [vmem:[#allocation3 + $0x271] ss:$2 sm:$0xff]  ;;  %v709_v2 = vld [vmem:[#allocation3 + $0x272] ss:$2 sm:$0xff] }
  0xd9   :  { %894 = vmatmul.f32.gmra.mxu2 %v825_v3  ;;  %v839_v3 = vld [vmem:[#allocation3 + $0x288] ss:$2 sm:$0xff] }
  0xda   :  { %1024 = vmatmul.f32.gmra.mxu3 %v955_v5  ;;  %v969_v5 = vld [vmem:[#allocation3 + $0x289] ss:$2 sm:$0xff] }
  0xdc   :  { %v375_v8 = vpop.f32.mrf.mxu2 }
  0xdd   :  { %v413_v9 = vadd.f32 %v375_v8, %v262_v7  ;;  %v199_v10 = vpop.f32.mrf.mxu0  ;;  %v264_v13 = vpop.f32.mrf.mxu1  ;;  %v581_v7 = vld [vmem:[#allocation3 + $0x2a1] ss:$2 sm:$0xff]  ;;  %v711_v8 = vld [vmem:[#allocation3 + $0x2a2] ss:$2 sm:$0xff] }
  0xde   :  { %v505_v14 = vpop.f32.mrf.mxu3  ;;  %v265_v19 = vadd.f32 %v264_v13, %v199_v10  ;;  %v971_v10 = vld [vmem:[#allocation3 + $0x2b9] ss:$2 sm:$0xff]  ;;  %v713_v13 = vld [vmem:[#allocation3 + $0x2d2] ss:$2 sm:$0xff] }
  0xdf   :  { %v2458_v16 = vadd.f32 %v505_v14, %v413_v9  ;;  %v841_v9 = vld [vmem:[#allocation3 + $0x2b8] ss:$2 sm:$0xff]  ;;  %v843_v14 = vld [vmem:[#allocation3 + $0x2e8] ss:$2 sm:$0xff] }
  0xe0   :  { %637 = vmatmul.f32.gmra.mxu0 %v567_v11  ;;  %767 = vmatmul.f32.gmra.mxu1 %v697_v12  ;;  %v583_v12 = vld [vmem:[#allocation3 + $0x2d1] ss:$2 sm:$0xff] }
  0xe1   :  { %897 = vmatmul.f32.gmra.mxu2 %v827_v15  ;;  %v973_v15 = vld [vmem:[#allocation3 + $0x2e9] ss:$2 sm:$0xff] }
  0xe2   :  { %1027 = vmatmul.f32.gmra.mxu3 %v957_v17 }
  0xe4   :  { %v378_v21 = vpop.f32.mrf.mxu2 }
  0xe5   :  { %v414_v22 = vadd.f32 %v378_v21, %v265_v19  ;;  %v202_v23 = vpop.f32.mrf.mxu0  ;;  %v267_v29 = vpop.f32.mrf.mxu1  ;;  %v715_v19 = vld [vmem:[#allocation3 + $0x302] ss:$2 sm:$0xff] }
  0xe6   :  { %v508_v26 = vpop.f32.mrf.mxu3  ;;  %v268_v33 = vadd.f32 %v267_v29, %v202_v23  ;;  %v845_v21 = vld [vmem:[#allocation3 + $0x318] ss:$2 sm:$0xff] }
  0xe7   :  { %v2460_v28 = vadd.f32 %v508_v26, %v414_v22  ;;  %v975_v22 = vld [vmem:[#allocation3 + $0x319] ss:$2 sm:$0xff]  ;;  %v1077_v26 = vld [vmem:[#allocation3 + $0x62] ss:$2 sm:$0xff] }
  0xe8   :  { %640 = vmatmul.f32.gmra.mxu0 %v569_v24  ;;  %770 = vmatmul.f32.gmra.mxu1 %v699_v25  ;;  %v1075_v24 = vld [vmem:[#allocation3 + $0x32] ss:$2 sm:$0xff] }
  0xe9   :  { %900 = vmatmul.f32.gmra.mxu2 %v829_v27 }
  0xea   :  { %1030 = vmatmul.f32.gmra.mxu3 %v959_v30 }
  0xec   :  { %v381_v34 = vpop.f32.mrf.mxu2 }
  0xed   :  { %v415_v35 = vadd.f32 %v381_v34, %v268_v33  ;;  %v2462_v36 = vpop.f32.mrf.mxu0  ;;  %v2484_v27 = vpop.f32.mrf.mxu1  ;;  %v1079_v33 = vld [vmem:[#allocation3 + $0x92] ss:$2 sm:$0xff] }
  0xee   :  { %v511_v39 = vpop.f32.mrf.mxu3 }
  0xef   :  { %v2464_v41 = vadd.f32 %v511_v39, %v415_v35  ;;  %v1081_v39 = vld [vmem:[#allocation3 + $0xc2] ss:$2 sm:$0xff] }
  0xf0   :  { %643 = vmatmul.f32.gmra.mxu0 %v571_v37  ;;  %773 = vmatmul.f32.gmra.mxu1 %v701_v38 }
  0xf1   :  { %903 = vmatmul.f32.gmra.mxu2 %v831_v40 }
  0xf2   :  { %1033 = vmatmul.f32.gmra.mxu3 %v961_v42 }
  0xf4   :  { %v2486_v29 = vpop.f32.mrf.mxu2 }
  0xf5   :  { %v2466_v45 = vpop.f32.mrf.mxu0  ;;  %v2492_v34 = vpop.f32.mrf.mxu1 }
  0xf6   :  { %v2488_v30 = vpop.f32.mrf.mxu3 }
  0xf8   :  { %646 = vmatmul.f32.gmra.mxu0 %v573_v46  ;;  %776 = vmatmul.f32.gmra.mxu1 %v703_v47  ;;  %v1083_v46 = vld [vmem:[#allocation3 + $0xf2] ss:$2 sm:$0xff] }
  0xf9   :  { %906 = vmatmul.f32.gmra.mxu2 %v833_v48 }
  0xfa   :  { %1036 = vmatmul.f32.gmra.mxu3 %v963_v49 }
  0xfc   :  { %v2494_v35 = vpop.f32.mrf.mxu2 }
  0xfd   :  { %v2468_v51 = vpop.f32.mrf.mxu0  ;;  %v2500_v40 = vpop.f32.mrf.mxu1 }
  0xfe   :  { %v2496_v37 = vpop.f32.mrf.mxu3 }
 0x100   :  { %649 = vmatmul.f32.gmra.mxu0 %v575_v52  ;;  %779 = vmatmul.f32.gmra.mxu1 %v705_v53  ;;  %v1085_v52 = vld [vmem:[#allocation3 + $0x122] ss:$2 sm:$0xff] }
 0x101   :  { %909 = vmatmul.f32.gmra.mxu2 %v835_v54 }
 0x102   :  { %1039 = vmatmul.f32.gmra.mxu3 %v965_v55  ;;  %v1087_v55 = vld [vmem:[#allocation3 + $0x152] ss:$2 sm:$0xff] }
 0x104   :  { %v2502_v42 = vpop.f32.mrf.mxu2 }
 0x105   :  { %v2470_v58 = vpop.f32.mrf.mxu0  ;;  %v2508_v48 = vpop.f32.mrf.mxu1 }
 0x106   :  { %v2506_v47 = vpop.f32.mrf.mxu3 }
 0x108   :  { %652 = vmatmul.f32.gmra.mxu0 %v577_v59  ;;  %782 = vmatmul.f32.gmra.mxu1 %v707_v60 }
 0x109   :  { %912 = vmatmul.f32.gmra.mxu2 %v837_v61 }
 0x10a   :  { %1042 = vmatmul.f32.gmra.mxu3 %v967_v62  ;;  %v1089_v62 = vld [vmem:[#allocation3 + $0x182] ss:$2 sm:$0xff] }
 0x10c   :  { %v2510_v49 = vpop.f32.mrf.mxu2 }
 0x10d   :  { %v2472_v0 = vpop.f32.mrf.mxu0  ;;  %v2518_v57 = vpop.f32.mrf.mxu1 }
 0x10e   :  { %v2514_v53 = vpop.f32.mrf.mxu3 }
 0x110   :  { %655 = vmatmul.f32.gmra.mxu0 %v579_v1  ;;  %785 = vmatmul.f32.gmra.mxu1 %v709_v2 }
 0x111   :  { %915 = vmatmul.f32.gmra.mxu2 %v839_v3 }
 0x112   :  { %1045 = vmatmul.f32.gmra.mxu3 %v969_v5  ;;  %v1091_v5 = vld [vmem:[#allocation3 + $0x1ca] ss:$2 sm:$0xff] }
 0x114   :  { %v2520_v59 = vpop.f32.mrf.mxu2 }
 0x115   :  { %v2474_v6 = vpop.f32.mrf.mxu0  ;;  %v2526_v63 = vpop.f32.mrf.mxu1 }
 0x116   :  { %v2522_v60 = vpop.f32.mrf.mxu3 }
 0x118   :  { %658 = vmatmul.f32.gmra.mxu0 %v581_v7  ;;  %788 = vmatmul.f32.gmra.mxu1 %v711_v8 }
 0x119   :  { %918 = vmatmul.f32.gmra.mxu2 %v841_v9 }
 0x11a   :  { %1048 = vmatmul.f32.gmra.mxu3 %v971_v10  ;;  %v1093_v10 = vld [vmem:[#allocation3 + $0x1fa] ss:$2 sm:$0xff] }
 0x11c   :  { %v2528_v1 = vpop.f32.mrf.mxu2 }
 0x11d   :  { %v2476_v11 = vpop.f32.mrf.mxu0  ;;  %v2534_v7 = vpop.f32.mrf.mxu1 }
 0x11e   :  { %2799 = vst [vmem:[#allocation13_spill] sm:$0xff] %v2476_v11  ;;  %v2530_v2 = vpop.f32.mrf.mxu3  ;;  %v1809_v11 = vld [vmem:[#allocation8 + $0x340] sm:$0xff] }
 0x11f   :  { %2801 = vst [vmem:[#allocation15_spill] sm:$0xff] %v2534_v7  ;;  %v1811_v7 = vld [vmem:[#allocation8 + $0x350] sm:$0xff] }
 0x120   :  { %661 = vmatmul.f32.gmra.mxu0 %v583_v12  ;;  %791 = vmatmul.f32.gmra.mxu1 %v713_v13  ;;  %v1373_v12 = vld [vmem:[#allocation8 + $0xf8] sm:$0xff] }
 0x121   :  { %921 = vmatmul.f32.gmra.mxu2 %v843_v14  ;;  %2218 = vmatpush.msra.mxu3 %v1373_v12  ;;  %v1340_v14 = vld [vmem:[#allocation8 + $0x78] sm:$0xff] }
 0x122   :  { %1051 = vmatmul.f32.gmra.mxu3 %v973_v15  ;;  %1374 = vmatpush.msra.mxu1 %v1373_v12  ;;  %v1336_v12 = vld [vmem:[#allocation8 + $0x58] sm:$0xff] }
 0x123   :  { %1415 = vmatpush.msra.mxu2 %v1340_v14 }
 0x124   :  { %v2536_v8 = vpop.f32.mrf.mxu2 }
 0x125   :  { %v2478_v17 = vpop.f32.mrf.mxu0  ;;  %2802 = vst [vmem:[#allocation16_spill] sm:$0xff] %v2536_v8  ;;  %v2542_v15 = vpop.f32.mrf.mxu1  ;;  %v1328_v8 = vld [vmem:[#allocation8 + $0x18] sm:$0xff] }
 0x126   :  { %2800 = vst [vmem:[#allocation14_spill] sm:$0xff] %v2478_v17  ;;  %v2540_v13 = vpop.f32.mrf.mxu3  ;;  %v1330_v17 = vld [vmem:[#allocation8 + $0x28] sm:$0xff] }
 0x127   :  { %2803 = vst [vmem:[#allocation17_spill] sm:$0xff] %v2540_v13  ;;  %v1814_v13 = vld [vmem:[#allocation8 + $0x368] sm:$0xff] }
 0x128   :  { %664 = vmatmul.f32.gmra.mxu0 %v585_v18  ;;  %794 = vmatmul.f32.gmra.mxu1 %v715_v19  ;;  %2804 = vst [vmem:[#allocation18_spill] sm:$0xff] %v2542_v15  ;;  %v1331_v15 = vld [vmem:[#allocation8 + $0x30] sm:$0xff] }
 0x129   :  { %924 = vmatmul.f32.gmra.mxu2 %v845_v21  ;;  %v1095_v21 = vld [vmem:[#allocation3 + $0x22a] ss:$2 sm:$0xff] }
 0x12a   :  { %1054 = vmatmul.f32.gmra.mxu3 %v975_v22  ;;  %v1372_v22 = vld [vmem:[#allocation8 + $0xf0] sm:$0xff] }
 0x12b   :  { %2219 = vmatpush.msra.mxu3 %v1372_v22  ;;  %1375 = vmatpush.msra.mxu1 %v1372_v22  ;;  %v1335_v22 = vld [vmem:[#allocation8 + $0x50] sm:$0xff] }
 0x12c   :  { %v2544_v18 = vpop.f32.mrf.mxu2 }
 0x12d   :  { %v2480_v23 = vpop.f32.mrf.mxu0  ;;  %2805 = vst [vmem:[#allocation19_spill] sm:$0xff] %v2544_v18  ;;  %v1365_v18 = vld [vmem:[#allocation8 + $0xb8] sm:$0xff] }
 0x130   :  { %1139 = vmatmul.f32.vlgmr.msra.gmra.mxu0 %v1075_v24  ;;  %v1339_v24 = vld [vmem:[#allocation8 + $0x70] sm:$0xff] }
 0x131   :  { %1416 = vmatpush.msra.mxu2 %v1339_v24  ;;  %v1367_v24 = vld [vmem:[#allocation8 + $0xc8] sm:$0xff] }
 0x134   :  { %v2554_v14 = vpop.f32.mrf.mxu2 }
 0x135   :  { %v2482_v25 = vpop.f32.mrf.mxu0 }
 0x138   :  { %1142 = vmatmul.f32.gmra.mxu0 %v1077_v26  ;;  %v1371_v26 = vld [vmem:[#allocation8 + $0xe8] sm:$0xff] }
 0x139   :  { %1376 = vmatpush.msra.mxu1 %v1371_v26  ;;  %2220 = vmatpush.msra.mxu3 %v1371_v26  ;;  %v1334_v26 = vld [vmem:[#allocation8 + $0x48] sm:$0xff] }
 0x13d   :  { %v2490_v31 = vpop.f32.mrf.mxu0 }
 0x140   :  { %1145 = vmatmul.f32.gmra.mxu0 %v1079_v33  ;;  %v1338_v33 = vld [vmem:[#allocation8 + $0x68] sm:$0xff] }
 0x141   :  { %1417 = vmatpush.msra.mxu2 %v1338_v33 }
 0x145   :  { %v2498_v38 = vpop.f32.mrf.mxu0 }
 0x148   :  { %1148 = vmatmul.f32.gmra.mxu0 %v1081_v39  ;;  %v2548_v39 = vpop.f32.mrf.mxu3 }
 0x149   :  { %2806 = vst [vmem:[#allocation20_spill] sm:$0xff] %v2548_v39  ;;  %v1333_v39 = vld [vmem:[#allocation8 + $0x40] sm:$0xff] }
 0x14d   :  { %v2504_v43 = vpop.f32.mrf.mxu0 }
 0x150   :  { %1151 = vmatmul.f32.gmra.mxu0 %v1083_v46  ;;  %v1370_v46 = vld [vmem:[#allocation8 + $0xe0] sm:$0xff]  ;;  %v2556_v33 = vpop.f32.mrf.mxu3 }
 0x151   :  { %1377 = vmatpush.msra.mxu1 %v1370_v46  ;;  %2221 = vmatpush.msra.mxu3 %v1370_v46  ;;  %v1099_v46 = vld [vmem:[#allocation3 + $0x28a] ss:$2 sm:$0xff] }
 0x155   :  { %v2512_v50 = vpop.f32.mrf.mxu0 }
 0x158   :  { %1154 = vmatmul.f32.gmra.mxu0 %v1085_v52  ;;  %v1337_v52 = vld [vmem:[#allocation8 + $0x60] sm:$0xff] }
 0x159   :  { %1418 = vmatpush.msra.mxu2 %v1337_v52  ;;  %v1366_v52 = vld [vmem:[#allocation8 + $0xc0] sm:$0xff] }
 0x15b   :  { %1419 = vmatpush.msra.mxu2 %v1336_v12 }
 0x15d   :  { %v2516_v54 = vpop.f32.mrf.mxu0  ;;  %1420 = vmatpush.msra.mxu2 %v1335_v22 }
 0x15f   :  { %1421 = vmatpush.msra.mxu2 %v1334_v26  ;;  %v2562_v26 = vpop.f32.mrf.mxu2 }
 0x160   :  { %1157 = vmatmul.f32.gmra.mxu0 %v1087_v55  ;;  %v2550_v55 = vpop.f32.mrf.mxu1 }
 0x161   :  { %1422 = vmatpush.msra.mxu2 %v1333_v39  ;;  %v1363_v39 = vld [vmem:[#allocation8 + $0xa8] sm:$0xff] }
 0x165   :  { %v2524_v61 = vpop.f32.mrf.mxu0 }
 0x168   :  { %1160 = vmatmul.f32.gmra.mxu0 %v1089_v62  ;;  %v2560_v22 = vpop.f32.mrf.mxu1 }
 0x16d   :  { %v2532_v3 = vpop.f32.mrf.mxu0 }
 0x170   :  { %1163 = vmatmul.f32.gmra.mxu0 %v1091_v5  ;;  %v1097_v5 = vld [vmem:[#allocation3 + $0x25a] ss:$2 sm:$0xff] }
 0x175   :  { %v2538_v9 = vpop.f32.mrf.mxu0 }
 0x178   :  { %1166 = vmatmul.f32.gmra.mxu0 %v1093_v10  ;;  %v1369_v10 = vld [vmem:[#allocation8 + $0xd8] sm:$0xff] }
 0x179   :  { %1378 = vmatpush.msra.mxu1 %v1369_v10  ;;  %2222 = vmatpush.msra.mxu3 %v1369_v10  ;;  %v1332_v10 = vld [vmem:[#allocation8 + $0x38] sm:$0xff] }
 0x17a   :  { %1423 = vmatpush.msra.mxu2 %v1332_v10  ;;  %v1362_v10 = vld [vmem:[#allocation8 + $0xa0] sm:$0xff] }
 0x17c   :  { %1424 = vmatpush.msra.mxu2 %v1331_v15  ;;  %v2566_v15 = vpop.f32.mrf.mxu3 }
 0x17d   :  { %v2546_v19 = vpop.f32.mrf.mxu0 }
 0x17e   :  { %1425 = vmatpush.msra.mxu2 %v1330_v17  ;;  %v1812_v17 = vld [vmem:[#allocation8 + $0x358] sm:$0xff] }
 0x180   :  { %1169 = vmatmul.f32.gmra.mxu0 %v1095_v21  ;;  %v1368_v21 = vld [vmem:[#allocation8 + $0xd0] sm:$0xff] }
 0x181   :  { %1379 = vmatpush.msra.mxu1 %v1368_v21  ;;  %2223 = vmatpush.msra.mxu3 %v1368_v21  ;;  %v1364_v21 = vld [vmem:[#allocation8 + $0xb0] sm:$0xff] }
 0x183   :  { %1380 = vmatpush.msra.mxu1 %v1367_v24  ;;  %2224 = vmatpush.msra.mxu3 %v1367_v24  ;;  %v1815_v24 = vld [vmem:[#allocation8 + $0x370] sm:$0xff] }
 0x185   :  { %v2552_v62 = vpop.f32.mrf.mxu0  ;;  %1381 = vmatpush.msra.mxu1 %v1366_v52  ;;  %2225 = vmatpush.msra.mxu3 %v1366_v52  ;;  %v2398_v52 = vmov 0.0  }
 0x186   :  { %1241 = vst [vmem:[#allocation2 + $0x8] sm:$0xff] %v2398_v52 }
 0x187   :  { %1382 = vmatpush.msra.mxu1 %v1365_v18  ;;  %2226 = vmatpush.msra.mxu3 %v1365_v18  ;;  %v1813_v18 = vld [vmem:[#allocation8 + $0x360] sm:$0xff]  ;;  %1242 = vst [vmem:[#allocation2 + $0x10] sm:$0xff] %v2398_v52 }
 0x188   :  { %1172 = vmatmul.f32.gmra.mxu0 %v1097_v5  ;;  %v1816_v5 = vld [vmem:[#allocation8 + $0x378] sm:$0xff]  ;;  %1244 = vst [vmem:[#allocation2 + $0x20] sm:$0xff] %v2398_v52 }
 0x189   :  { %1817 = vmatpush.msrb.mxu0 %v1816_v5  ;;  %1383 = vmatpush.msra.mxu1 %v1364_v21  ;;  %v1329_v5 = vld [vmem:[#allocation8 + $0x20] sm:$0xff]  ;;  %1245 = vst [vmem:[#allocation2 + $0x28] sm:$0xff] %v2398_v52 }
 0x18a   :  { %2227 = vmatpush.msra.mxu3 %v1364_v21  ;;  %1426 = vmatpush.msra.mxu2 %v1329_v5  ;;  %v1361_v21 = vld [vmem:[#allocation8 + $0x98] sm:$0xff]  ;;  %1247 = vst [vmem:[#allocation2 + $0x38] sm:$0xff] %v2398_v52  ;;  %v2574_v5 = vpop.f32.mrf.mxu1 }
 0x18b   :  { %1818 = vmatpush.msrb.mxu0 %v1815_v24  ;;  %1384 = vmatpush.msra.mxu1 %v1363_v39  ;;  %1248 = vst [vmem:[#allocation2 + $0x40] sm:$0xff] %v2398_v52 }
 0x18c   :  { %2228 = vmatpush.msra.mxu3 %v1363_v39  ;;  %1427 = vmatpush.msra.mxu2 %v1328_v8  ;;  %v1327_v39 = vld [vmem:[#allocation8 + $0x10] sm:$0xff]  ;;  %1250 = vst [vmem:[#allocation2 + $0x50] sm:$0xff] %v2398_v52  ;;  %v2578_v8 = vpop.f32.mrf.mxu2 }
 0x18d   :  { %v2558_v12 = vpop.f32.mrf.mxu0  ;;  %1819 = vmatpush.msrb.mxu0 %v1814_v13  ;;  %1385 = vmatpush.msra.mxu1 %v1362_v10  ;;  %v1360_v13 = vld [vmem:[#allocation8 + $0x90] sm:$0xff]  ;;  %1251 = vst [vmem:[#allocation2 + $0x58] sm:$0xff] %v2398_v52 }
 0x18e   :  { %2229 = vmatpush.msra.mxu3 %v1362_v10  ;;  %1428 = vmatpush.msra.mxu2 %v1327_v39  ;;  %v1810_v10 = vld [vmem:[#allocation8 + $0x348] sm:$0xff]  ;;  %1253 = vst [vmem:[#allocation2 + $0x68] sm:$0xff] %v2398_v52 }
 0x18f   :  { %1820 = vmatpush.msrb.mxu0 %v1813_v18  ;;  %1386 = vmatpush.msra.mxu1 %v1361_v21  ;;  %v1359_v18 = vld [vmem:[#allocation8 + $0x88] sm:$0xff]  ;;  %1254 = vst [vmem:[#allocation2 + $0x70] sm:$0xff] %v2398_v52 }
 0x190   :  { %1175 = vmatmul.f32.gmra.mxu0 %v1099_v46  ;;  %v1101_v46 = vld [vmem:[#allocation3 + $0x2ba] ss:$2 sm:$0xff]  ;;  %2230 = vmatpush.msra.mxu3 %v1361_v21  ;;  %v1103_v39 = vld [vmem:[#allocation3 + $0x2ea] ss:$2 sm:$0xff]  ;;  %1256 = vst [vmem:[#allocation2 + $0x80] sm:$0xff] %v2398_v52 }
 0x191   :  { %1821 = vmatpush.msrb.mxu0 %v1812_v17  ;;  %1387 = vmatpush.msra.mxu1 %v1360_v13  ;;  %v1325_v17 = vld [vmem:[#allocation8] sm:$0xff]  ;;  %v1808_v21 = vld [vmem:[#allocation8 + $0x338] sm:$0xff]  ;;  %1257 = vst [vmem:[#allocation2 + $0x88] sm:$0xff] %v2398_v52 }
 0x192   :  { %2231 = vmatpush.msra.mxu3 %v1360_v13  ;;  %1259 = vst [vmem:[#allocation2 + $0x98] sm:$0xff] %v2398_v52  ;;  %v1806_v13 = vld [vmem:[#allocation8 + $0x328] sm:$0xff] }
 0x193   :  { %1822 = vmatpush.msrb.mxu0 %v1811_v7  ;;  %1388 = vmatpush.msra.mxu1 %v1359_v18  ;;  %1260 = vst [vmem:[#allocation2 + $0xa0] sm:$0xff] %v2398_v52 }
 0x194   :  { %2232 = vmatpush.msra.mxu3 %v1359_v18  ;;  %1262 = vst [vmem:[#allocation2 + $0xb0] sm:$0xff] %v2398_v52  ;;  %v2594_v18 = vpop.f32.mrf.mxu1 }
 0x195   :  { %v2568_v24 = vpop.f32.mrf.mxu0  ;;  %1823 = vmatpush.msrb.mxu0 %v1810_v10  ;;  %v1807_v10 = vld [vmem:[#allocation8 + $0x330] sm:$0xff]  ;;  %1263 = vst [vmem:[#allocation2 + $0xb8] sm:$0xff] %v2398_v52 }
 0x196   :  { %2807 = vst [vmem:[#allocation21_spill] sm:$0xff] %v2568_v24  ;;  %v1326_v24 = vld [vmem:[#allocation8 + $0x8] sm:$0xff] }
 0x197   :  { %1429 = vmatpush.msra.mxu2 %v1326_v24  ;;  %1824 = vmatpush.msrb.mxu0 %v1809_v11  ;;  %v2586_v24 = vpop.f32.mrf.mxu3  ;;  %v668_v11 = vadd.f32 %v2480_v23, %v2448_v20  ;;  %1264 = vst [vmem:[#allocation2 + $0xc0] sm:$0xff] %v2398_v52  ;;  %v1803_v23 = vld [vmem:[#allocation8 + $0x310] sm:$0xff] }
 0x198   :  { %1178 = vmatmul.f32.gmra.mxu0 %v1101_v46  ;;  %v1358_v46 = vld [vmem:[#allocation8 + $0x80] sm:$0xff]  ;;  %1265 = vst [vmem:[#allocation2 + $0xc8] sm:$0xff] %v2398_v52 }
 0x199   :  { %1389 = vmatpush.msra.mxu1 %v1358_v46  ;;  %1430 = vmatpush.msra.mxu2 %v1325_v17  ;;  %v1805_v17 = vld [vmem:[#allocation8 + $0x320] sm:$0xff]  ;;  %1266 = vst [vmem:[#allocation2 + $0xd0] sm:$0xff] %v2398_v52  ;;  %v798_v20 = vadd.f32 %v2550_v55, %v668_v11  ;;  %v669_v55 = vadd.f32 %v2482_v25, %v2450_v32 }
 0x19a   :  { %1825 = vmatpush.msrb.mxu0 %v1808_v21  ;;  %2233 = vmatpush.msra.mxu3 %v1358_v46  ;;  %v1105_v21 = vld [vmem:[#allocation3 + $0x31a] ss:$2 sm:$0xff]  ;;  %1268 = vst [vmem:[#allocation2 + $0xe0] sm:$0xff] %v2398_v52  ;;  %v1801_v11 = vld [vmem:[#allocation8 + $0x300] sm:$0xff] }
 0x19b   :  { %1269 = vst [vmem:[#allocation2 + $0xe8] sm:$0xff] %v2398_v52  ;;  %v799_v32 = vadd.f32 %v2560_v22, %v669_v55 }
 0x19c   :  { %1826 = vmatpush.msrb.mxu0 %v1807_v10  ;;  %v1804_v10 = vld [vmem:[#allocation8 + $0x318] sm:$0xff]  ;;  %1271 = vst [vmem:[#allocation2 + $0xf8] sm:$0xff] %v2398_v52 }
 0x19d   :  { %v2582_v7 = vpop.f32.mrf.mxu0  ;;  %1272 = vst [vmem:[#allocation2 + $0x100] sm:$0xff] %v2398_v52 }
 0x19e   :  { %2808 = vst [vmem:[#allocation22_spill] sm:$0xff] %v2582_v7  ;;  %1827 = vmatpush.msrb.mxu0 %v1806_v13  ;;  %v928_v13 = vadd.f32 %v2554_v14, %v798_v20 }
 0x19f   :  { %v2608_v7 = vpop.f32.mrf.mxu3  ;;  %1274 = vst [vmem:[#allocation2 + $0x110] sm:$0xff] %v2398_v52 }
 0x1a0   :  { %1181 = vmatmul.f32.gmra.mxu0 %v1103_v39  ;;  %v2598_v39 = vpop.f32.mrf.mxu2  ;;  %1275 = vst [vmem:[#allocation2 + $0x118] sm:$0xff] %v2398_v52  ;;  %v1058_v14 = vadd.f32 %v2556_v33, %v928_v13  ;;  %v929_v33 = vadd.f32 %v2562_v26, %v799_v32 }
 0x1a1   :  { %1828 = vmatpush.msrb.mxu0 %v1805_v17  ;;  %v1802_v17 = vld [vmem:[#allocation8 + $0x308] sm:$0xff]  ;;  %1277 = vst [vmem:[#allocation2 + $0x128] sm:$0xff] %v2398_v52 }
 0x1a2   :  { %1278 = vst [vmem:[#allocation2 + $0x130] sm:$0xff] %v2398_v52  ;;  %v1059_v55 = vadd.f32 %v2566_v15, %v929_v33 }
 0x1a3   :  { %1829 = vmatpush.msrb.mxu0 %v1804_v10  ;;  %v2622_v10 = vpop.f32.mrf.mxu1  ;;  %1280 = vst [vmem:[#allocation2 + $0x140] sm:$0xff] %v2398_v52 }
 0x1a4   :  { %1281 = vst [vmem:[#allocation2 + $0x148] sm:$0xff] %v2398_v52 }
 0x1a5   :  { %v2600_v46 = vpop.f32.mrf.mxu0  ;;  %1830 = vmatpush.msrb.mxu0 %v1803_v23  ;;  %1283 = vst [vmem:[#allocation2 + $0x158] sm:$0xff] %v2398_v52 }
 0x1a6   :  { %2809 = vst [vmem:[#allocation23_spill] sm:$0xff] %v2600_v46  ;;  %v1565_v46 = vld [vmem:[#allocation8 + $0x1d0] sm:$0xff] }
 0x1a7   :  { %1831 = vmatpush.msrb.mxu0 %v1802_v17  ;;  %1284 = vst [vmem:[#allocation2 + $0x160] sm:$0xff] %v2398_v52  ;;  %v670_v17 = vadd.f32 %v2490_v31, %v2452_v44  ;;  %v2637_v22 = vpop.f32.mrf.mxu3  ;;  %v1569_v31 = vld [vmem:[#allocation8 + $0x1f0] sm:$0xff] }
 0x1a8   :  { %1184 = vmatmul.f32.gmra.mxu0 %v1105_v21  ;;  %v2619_v21 = vld [vmem:[%s2795_s2] ss:$0 sm:$0xff]  ;;  %v2627_v23 = vpop.f32.mrf.mxu2  ;;  %1286 = vst [vmem:[#allocation2 + $0x170] sm:$0xff] %v2398_v52 }
 0x1a9   :  { %1832 = vmatpush.msrb.mxu0 %v1801_v11  ;;  %1287 = vst [vmem:[#allocation2 + $0x178] sm:$0xff] %v2398_v52 }
 0x1aa   :  { %1289 = vst [vmem:[#allocation2 + $0x188] sm:$0xff] %v2398_v52 }
 0x1ab   :  { %1290 = vst [vmem:[#allocation2 + $0x190] sm:$0xff] %v2398_v52  ;;  %v2644_v44 = vpop.f32.mrf.mxu1 }
 0x1ac   :  { %1291 = vst [vmem:[#allocation2 + $0x198] sm:$0xff] %v2398_v52 }
 0x1ad   :  { %v1140_v20 = vpop.f32.mrf.mxu0  ;;  %1292 = vst [vmem:[#allocation2 + $0x1a0] sm:$0xff] %v2398_v52 }
 0x1ae   :  { %v1188_v25 = vadd.f32 %v1140_v20, %v1058_v14  ;;  %v1570_v14 = vld [vmem:[#allocation8 + $0x1f8] sm:$0xff]  ;;  %v800_v20 = vadd.f32 %v2574_v5, %v670_v17  ;;  %1293 = vst [vmem:[#allocation2 + $0x1a8] sm:$0xff] %v2398_v52  ;;  %v1568_v5 = vld [vmem:[#allocation8 + $0x1e8] sm:$0xff] }
 0x1af   :  { %1571 = vmatpush.msrb.mxu1 %v1570_v14  ;;  %v1025_v14 = vpop.f32.mrf.mxu3 }
 0x1b0   :  { %v1208_v13 = vadd.f32 %v2619_v21, %v1188_v25  ;;  %v930_v25 = vadd.f32 %v2578_v8, %v800_v20  ;;  %v2650_v33 = vpop.f32.mrf.mxu2 }
 0x1b1   :  { %1572 = vmatpush.msrb.mxu1 %v1569_v31 }
 0x1b2   :  { %v1224_v11 = vmax.f32 %v1208_v13, 0.0  ;;  %v671_v13 = vadd.f32 %v2498_v38, %v2454_v56  ;;  %v1060_v8 = vadd.f32 %v2586_v24, %v930_v25  ;;  %v672_v24 = vadd.f32 %v2504_v43, %v2456_v4  ;;  %v1560_v43 = vld [vmem:[#allocation8 + $0x1a8] sm:$0xff] }
 0x1b3   :  { %1573 = vmatpush.msrb.mxu1 %v1568_v5  ;;  %v1564_v5 = vld [vmem:[#allocation8 + $0x1c8] sm:$0xff] }
 0x1b4   :  { %1294 = vst [vmem:[#allocation2] sm:$0xff] %v1224_v11  ;;  %v801_v52 = vadd.f32 %v2594_v18, %v671_v13  ;;  %v1562_v13 = vld [vmem:[#allocation8 + $0x1b8] sm:$0xff] }
 0x1b5   :  { %v1143_v26 = vpop.f32.mrf.mxu0 }
 0x1b6   :  { %v1189_v32 = vadd.f32 %v1143_v26, %v1059_v55  ;;  %v1567_v26 = vld [vmem:[#allocation8 + $0x1e0] sm:$0xff]  ;;  %v931_v56 = vadd.f32 %v2598_v39, %v801_v52  ;;  %v802_v39 = vadd.f32 %v2622_v10, %v672_v24 }
 0x1b7   :  { %1574 = vmatpush.msrb.mxu1 %v1567_v26 }
 0x1b8   :  { %v1209_v15 = vadd.f32 %v2619_v21, %v1189_v32  ;;  %v1566_v32 = vld [vmem:[#allocation8 + $0x1d8] sm:$0xff] }
 0x1b9   :  { %1575 = vmatpush.msrb.mxu1 %v1566_v32  ;;  %v673_v32 = vadd.f32 %v2512_v50, %v2458_v16  ;;  %v1557_v50 = vld [vmem:[#allocation8 + $0x190] sm:$0xff] }
 0x1ba   :  { %v1225_v17 = vmax.f32 %v1209_v15, 0.0  ;;  %v768_v15 = vpop.f32.mrf.mxu1 }
 0x1bb   :  { %v1342_v11 = vld [vmem:[#allocation2 + $0x1] ss:$2 sm:$0xff]  ;;  %v1310_v55 = vld [vmem:[#allocation2] ss:$2 sm:$0xff]  ;;  %1576 = vmatpush.msrb.mxu1 %v1565_v46  ;;  %v1561_v46 = vld [vmem:[#allocation8 + $0x1b0] sm:$0xff] }
 0x1bc   :  { %1295 = vst [vmem:[#allocation2 + $0x18] sm:$0xff] %v1225_v17  ;;  %1390 = vmatmul.f32.vlgmr.msra.gmra.mxu1 %v1342_v11  ;;  %1431 = vmatmul.f32.vlgmr.msra.gmra.mxu2 %v1310_v55  ;;  %v898_v17 = vpop.f32.mrf.mxu2  ;;  %v1563_v11 = vld [vmem:[#allocation8 + $0x1c0] sm:$0xff]  ;;  %v1061_v55 = vadd.f32 %v2608_v7, %v931_v56 }
 0x1bd   :  { %v1146_v20 = vpop.f32.mrf.mxu0  ;;  %1577 = vmatpush.msrb.mxu1 %v1564_v5  ;;  %v1559_v5 = vld [vmem:[#allocation8 + $0x1a0] sm:$0xff] }
 0x1be   :  { %v1190_v31 = vadd.f32 %v1146_v20, %v1060_v8  ;;  %v1028_v8 = vpop.f32.mrf.mxu3  ;;  %v932_v20 = vadd.f32 %v2627_v23, %v802_v39  ;;  %v674_v39 = vadd.f32 %v2516_v54, %v2460_v28  ;;  %v675_v28 = vadd.f32 %v2524_v61, %v2464_v41 }
 0x1bf   :  { %1578 = vmatpush.msrb.mxu1 %v1563_v11  ;;  %v803_v11 = vadd.f32 %v2644_v44, %v673_v32 }
 0x1c0   :  { %v1210_v38 = vadd.f32 %v2619_v21, %v1190_v31  ;;  %v1062_v10 = vadd.f32 %v2637_v22, %v932_v20  ;;  %v1556_v22 = vld [vmem:[#allocation8 + $0x188] sm:$0xff] }
 0x1c1   :  { %1579 = vmatpush.msrb.mxu1 %v1562_v13 }
 0x1c2   :  { %v1226_v25 = vmax.f32 %v1210_v38, 0.0  ;;  %v771_v52 = vpop.f32.mrf.mxu1 }
 0x1c3   :  { %1580 = vmatpush.msrb.mxu1 %v1561_v46  ;;  %v1555_v46 = vld [vmem:[#allocation8 + $0x180] sm:$0xff] }
 0x1c4   :  { %1296 = vst [vmem:[#allocation2 + $0x30] sm:$0xff] %v1226_v25  ;;  %v901_v23 = vpop.f32.mrf.mxu2  ;;  %v1558_v25 = vld [vmem:[#allocation8 + $0x198] sm:$0xff] }
 0x1c5   :  { %v1149_v18 = vpop.f32.mrf.mxu0  ;;  %1581 = vmatpush.msrb.mxu1 %v1560_v43  ;;  %v804_v43 = vadd.f32 %v768_v15, %v674_v39 }
 0x1c6   :  { %v1191_v26 = vadd.f32 %v1149_v18, %v1061_v55  ;;  %v933_v55 = vadd.f32 %v2650_v33, %v803_v11  ;;  %v1031_v13 = vpop.f32.mrf.mxu3 }
 0x1c7   :  { %1582 = vmatpush.msrb.mxu1 %v1559_v5  ;;  %v934_v33 = vadd.f32 %v898_v17, %v804_v43  ;;  %v805_v17 = vadd.f32 %v771_v52, %v675_v28 }
 0x1c8   :  { %v1211_v4 = vadd.f32 %v2619_v21, %v1191_v26  ;;  %v1063_v20 = vadd.f32 %v1025_v14, %v933_v55 }
 0x1c9   :  { %1583 = vmatpush.msrb.mxu1 %v1558_v25  ;;  %v1064_v25 = vadd.f32 %v1028_v8, %v934_v33 }
 0x1ca   :  { %v1227_v7 = vmax.f32 %v1211_v4, 0.0  ;;  %v774_v4 = vpop.f32.mrf.mxu1 }
 0x1cb   :  { %v1344_v31 = vld [vmem:[#allocation2 + $0x31] ss:$2 sm:$0xff]  ;;  %v1312_v56 = vld [vmem:[#allocation2 + $0x30] ss:$2 sm:$0xff]  ;;  %1584 = vmatpush.msrb.mxu1 %v1557_v50  ;;  %v274_v50 = vadd.f32 %v2492_v34, %v2466_v45  ;;  %v277_v45 = vadd.f32 %v2500_v40, %v2468_v51 }
 0x1cc   :  { %v1785_v38 = vld [vmem:[#allocation2 + $0x30] ss:$2 sm:$0xff]  ;;  %1297 = vst [vmem:[#allocation2 + $0x48] sm:$0xff] %v1227_v7  ;;  %1393 = vmatmul.f32.gmra.mxu1 %v1344_v31  ;;  %1434 = vmatmul.f32.gmra.mxu2 %v1312_v56  ;;  %v904_v7 = vpop.f32.mrf.mxu2  ;;  %v271_v56 = vadd.f32 %v2484_v27, %v2462_v36  ;;  %v935_v27 = vadd.f32 %v901_v23, %v805_v17 }
 0x1cd   :  { %1833 = vmatmul.f32.vlgmr.msrb.gmra.mxu0 %v1785_v38  ;;  %v1152_v24 = vpop.f32.mrf.mxu0  ;;  %1585 = vmatpush.msrb.mxu1 %v1556_v22  ;;  %v417_v55 = vadd.f32 %v2494_v35, %v274_v50 }
 0x1ce   :  { %v1192_v16 = vadd.f32 %v1152_v24, %v1062_v10  ;;  %v1034_v38 = vpop.f32.mrf.mxu3  ;;  %v416_v24 = vadd.f32 %v2486_v29, %v271_v56  ;;  %v280_v56 = vadd.f32 %v2508_v48, %v2470_v58  ;;  %v1487_v58 = vld [vmem:[#allocation8 + $0x170] sm:$0xff] }
 0x1cf   :  { %1586 = vmatpush.msrb.mxu1 %v1555_v46  ;;  %v1651_v48 = vld [vmem:[#allocation8 + $0x270] sm:$0xff] }
 0x1d0   :  { %v1212_v18 = vadd.f32 %v2619_v21, %v1192_v16  ;;  %v546_v36 = vadd.f32 %v2488_v30, %v416_v24  ;;  %v547_v30 = vadd.f32 %v2496_v37, %v417_v55  ;;  %v1488_v24 = vld [vmem:[#allocation8 + $0x178] sm:$0xff] }
 0x1d1   :  { %1489 = vmatpush.msrb.mxu3 %v1488_v24 }
 0x1d2   :  { %v1228_v26 = vmax.f32 %v1212_v18, 0.0  ;;  %v777_v16 = vpop.f32.mrf.mxu1  ;;  %v676_v29 = vadd.f32 %v2532_v3, %v546_v36  ;;  %v1065_v18 = vadd.f32 %v1031_v13, %v935_v27  ;;  %v677_v34 = vadd.f32 %v2538_v9, %v547_v30  ;;  %v1486_v27 = vld [vmem:[#allocation8 + $0x168] sm:$0xff] }
 0x1d3   :  { %1490 = vmatpush.msrb.mxu3 %v1487_v58 }
 0x1d4   :  { %1298 = vst [vmem:[#allocation2 + $0x60] sm:$0xff] %v1228_v26  ;;  %v907_v61 = vpop.f32.mrf.mxu2  ;;  %v806_v39 = vadd.f32 %v774_v4, %v676_v29 }
 0x1d5   :  { %v1155_v44 = vpop.f32.mrf.mxu0  ;;  %1491 = vmatpush.msrb.mxu3 %v1486_v27 }
 0x1d6   :  { %v1193_v32 = vadd.f32 %v1155_v44, %v1063_v20  ;;  %v1037_v22 = vpop.f32.mrf.mxu3  ;;  %v936_v23 = vadd.f32 %v904_v7, %v806_v39  ;;  %v807_v7 = vadd.f32 %v777_v16, %v677_v34  ;;  %v1649_v39 = vld [vmem:[#allocation8 + $0x260] sm:$0xff]  ;;  %v1897_v34 = vld [vmem:[#allocation8 + $0x3f0] sm:$0xff] }
 0x1d8   :  { %v1213_v31 = vadd.f32 %v2619_v21, %v1193_v32  ;;  %v418_v32 = vadd.f32 %v2502_v42, %v277_v45  ;;  %v1066_v4 = vadd.f32 %v1034_v38, %v936_v23  ;;  %v937_v40 = vadd.f32 %v907_v61, %v807_v7  ;;  %v1647_v45 = vld [vmem:[#allocation8 + $0x250] sm:$0xff] }
 0x1d9   :  { %v283_v61 = vadd.f32 %v2518_v57, %v2472_v0  ;;  %v1648_v57 = vld [vmem:[#allocation8 + $0x258] sm:$0xff] }
 0x1da   :  { %v1229_v54 = vmax.f32 %v1213_v31, 0.0  ;;  %v780_v20 = vpop.f32.mrf.mxu1  ;;  %v548_v51 = vadd.f32 %v2506_v47, %v418_v32  ;;  %v1896_v32 = vld [vmem:[#allocation8 + $0x3e8] sm:$0xff] }
 0x1db   :  { %v1346_v10 = vld [vmem:[#allocation2 + $0x61] ss:$2 sm:$0xff]  ;;  %v1314_v14 = vld [vmem:[#allocation2 + $0x60] ss:$2 sm:$0xff] }
 0x1dc   :  { %v1787_v5 = vld [vmem:[#allocation2 + $0x60] ss:$2 sm:$0xff]  ;;  %1299 = vst [vmem:[#allocation2 + $0x78] sm:$0xff] %v1229_v54  ;;  %1396 = vmatmul.f32.gmra.mxu1 %v1346_v10  ;;  %1437 = vmatmul.f32.gmra.mxu2 %v1314_v14  ;;  %v910_v44 = vpop.f32.mrf.mxu2  ;;  %v678_v28 = vadd.f32 %v2546_v19, %v548_v51  ;;  %v419_v14 = vadd.f32 %v2510_v49, %v280_v56 }
 0x1dd   :  { %1836 = vmatmul.f32.gmra.mxu0 %v1787_v5  ;;  %v1158_v15 = vpop.f32.mrf.mxu0  ;;  %v1791_v54 = vld [vmem:[#allocation2 + $0xc0] ss:$2 sm:$0xff]  ;;  %v1067_v5 = vadd.f32 %v1037_v22, %v937_v40 }
 0x1de   :  { %v1194_v11 = vadd.f32 %v1158_v15, %v1064_v25  ;;  %v1040_v31 = vpop.f32.mrf.mxu3  ;;  %v1539_v10 = vld [vmem:[#allocation2 + $0x18] ss:$2 sm:$0xff]  ;;  %v808_v17 = vadd.f32 %v780_v20, %v678_v28  ;;  %v549_v19 = vadd.f32 %v2514_v53, %v419_v14  ;;  %v420_v53 = vadd.f32 %v2520_v59, %v283_v61  ;;  %v1483_v59 = vld [vmem:[#allocation8 + $0x150] sm:$0xff] }
 0x1df   :  { %v1652_v15 = vld [vmem:[#allocation8 + $0x278] sm:$0xff]  ;;  %v1895_v56 = vld [vmem:[#allocation8 + $0x3e0] sm:$0xff]  ;;  %v1643_v14 = vld [vmem:[#allocation8 + $0x230] sm:$0xff] }
 0x1e0   :  { %v1214_v41 = vadd.f32 %v2619_v21, %v1194_v11  ;;  %1653 = vmatpush.msrb.mxu2 %v1652_v15  ;;  %v938_v16 = vadd.f32 %v910_v44, %v808_v17  ;;  %v679_v50 = vadd.f32 %v2552_v62, %v549_v19  ;;  %v1898_v62 = vld [vmem:[#allocation8 + $0x3f8] sm:$0xff]  ;;  %v1478_v15 = vld [vmem:[#allocation8 + $0x128] sm:$0xff]  ;;  %v2810_v17 = vld [vmem:[#allocation13_spill] sm:$0xff] }
 0x1e1   :  { %1899 = vmatpush.msra.mxu1 %v1898_v62  ;;  %v1480_v28 = vld [vmem:[#allocation8 + $0x138] sm:$0xff]  ;;  %v2814_v62 = vld [vmem:[#allocation17_spill] sm:$0xff] }
 0x1e2   :  { %v1230_v8 = vmax.f32 %v1214_v41, 0.0  ;;  %v783_v38 = vpop.f32.mrf.mxu1  ;;  %1654 = vmatpush.msrb.mxu2 %v1651_v48  ;;  %v1650_v41 = vld [vmem:[#allocation8 + $0x268] sm:$0xff]  ;;  %v1068_v22 = vadd.f32 %v1040_v31, %v938_v16  ;;  %v1645_v31 = vld [vmem:[#allocation8 + $0x240] sm:$0xff]  ;;  %v2813_v61 = vld [vmem:[#allocation16_spill] sm:$0xff] }
 0x1e3   :  { %v809_v23 = vadd.f32 %v783_v38, %v679_v50  ;;  %1900 = vmatpush.msra.mxu1 %v1897_v34  ;;  %v2812_v48 = vld [vmem:[#allocation21_spill] sm:$0xff]  ;;  %v1639_v34 = vld [vmem:[#allocation8 + $0x210] sm:$0xff] }
 0x1e4   :  { %1300 = vst [vmem:[#allocation2 + $0x90] sm:$0xff] %v1230_v8  ;;  %v913_v25 = vpop.f32.mrf.mxu2  ;;  %1655 = vmatpush.msrb.mxu2 %v1650_v41 }
 0x1e5   :  { %v1161_v52 = vpop.f32.mrf.mxu0  ;;  %v939_v44 = vadd.f32 %v913_v25, %v809_v23  ;;  %1901 = vmatpush.msra.mxu1 %v1896_v32 }
 0x1e6   :  { %v1195_v26 = vadd.f32 %v1161_v52, %v1065_v18  ;;  %v1043_v49 = vpop.f32.mrf.mxu3  ;;  %v1485_v18 = vld [vmem:[#allocation8 + $0x160] sm:$0xff]  ;;  %v1541_v52 = vld [vmem:[#allocation2 + $0x48] ss:$2 sm:$0xff]  ;;  %1656 = vmatpush.msrb.mxu2 %v1649_v39 }
 0x1e7   :  { %1492 = vmatpush.msrb.mxu3 %v1485_v18  ;;  %v1069_v40 = vadd.f32 %v1043_v49, %v939_v44  ;;  %1902 = vmatpush.msra.mxu1 %v1895_v56  ;;  %v1892_v49 = vld [vmem:[#allocation8 + $0x3c8] sm:$0xff]  ;;  %v1473_v56 = vld [vmem:[#allocation8 + $0x100] sm:$0xff] }
 0x1e8   :  { %v1215_v46 = vadd.f32 %v2619_v21, %v1195_v26  ;;  %v1484_v26 = vld [vmem:[#allocation8 + $0x158] sm:$0xff]  ;;  %1657 = vmatpush.msrb.mxu2 %v1648_v57  ;;  %v2815_v44 = vld [vmem:[#allocation14_spill] sm:$0xff] }
 0x1e9   :  { %1493 = vmatpush.msrb.mxu3 %v1484_v26  ;;  %v1890_v57 = vld [vmem:[#allocation8 + $0x3b8] sm:$0xff] }
 0x1ea   :  { %v1231_v3 = vmax.f32 %v1215_v46, 0.0  ;;  %v786_v30 = vpop.f32.mrf.mxu1  ;;  %1658 = vmatpush.msrb.mxu2 %v1647_v45 }
 0x1eb   :  { %v1348_v35 = vld [vmem:[#allocation2 + $0x91] ss:$2 sm:$0xff]  ;;  %v1316_v13 = vld [vmem:[#allocation2 + $0x90] ss:$2 sm:$0xff]  ;;  %1494 = vmatpush.msrb.mxu3 %v1483_v59 }
 0x1ec   :  { %v1789_v43 = vld [vmem:[#allocation2 + $0x90] ss:$2 sm:$0xff]  ;;  %1301 = vst [vmem:[#allocation2 + $0xa8] sm:$0xff] %v1231_v3  ;;  %1399 = vmatmul.f32.gmra.mxu1 %v1348_v35  ;;  %1440 = vmatmul.f32.gmra.mxu2 %v1316_v13  ;;  %v916_v20 = vpop.f32.mrf.mxu2  ;;  %v550_v3 = vadd.f32 %v2522_v60, %v420_v53  ;;  %v1482_v13 = vld [vmem:[#allocation8 + $0x148] sm:$0xff]  ;;  %v1481_v60 = vld [vmem:[#allocation8 + $0x140] sm:$0xff] }
 0x1ed   :  { %1839 = vmatmul.f32.gmra.mxu0 %v1789_v43  ;;  %v1164_v37 = vpop.f32.mrf.mxu0  ;;  %v1646_v43 = vld [vmem:[#allocation8 + $0x248] sm:$0xff]  ;;  %1495 = vmatpush.msrb.mxu3 %v1482_v13  ;;  %v1475_v59 = vld [vmem:[#allocation8 + $0x110] sm:$0xff] }
 0x1ee   :  { %v1196_v33 = vadd.f32 %v1164_v37, %v1066_v4  ;;  %v286_v4 = vadd.f32 %v2526_v63, %v2474_v6  ;;  %v680_v37 = vadd.f32 %v2558_v12, %v550_v3  ;;  %1659 = vmatpush.msrb.mxu2 %v1646_v43  ;;  %v1644_v6 = vld [vmem:[#allocation8 + $0x238] sm:$0xff]  ;;  %v1889_v3 = vld [vmem:[#allocation8 + $0x3b0] sm:$0xff]  ;;  %v2817_v43 = vld [vmem:[#allocation22_spill] sm:$0xff] }
 0x1ef   :  { %1496 = vmatpush.msrb.mxu3 %v1481_v60  ;;  %v1894_v63 = vld [vmem:[#allocation8 + $0x3d8] sm:$0xff]  ;;  %v1888_v60 = vld [vmem:[#allocation8 + $0x3a8] sm:$0xff] }
 0x1f0   :  { %v1216_v9 = vadd.f32 %v2619_v21, %v1196_v33  ;;  %v1046_v33 = vpop.f32.mrf.mxu3  ;;  %v421_v51 = vadd.f32 %v2528_v1, %v286_v4  ;;  %v810_v12 = vadd.f32 %v786_v30, %v680_v37  ;;  %1660 = vmatpush.msrb.mxu2 %v1645_v31  ;;  %v1893_v1 = vld [vmem:[#allocation8 + $0x3d0] sm:$0xff]  ;;  %1903 = vmatpush.msra.mxu1 %v1894_v63  ;;  %v1476_v30 = vld [vmem:[#allocation8 + $0x118] sm:$0xff]  ;;  %v1474_v37 = vld [vmem:[#allocation8 + $0x108] sm:$0xff] }
 0x1f1   :  { %1497 = vmatpush.msrb.mxu3 %v1480_v28  ;;  %v2818_v31 = vld [vmem:[#allocation19_spill] sm:$0xff] }
 0x1f2   :  { %v1232_v42 = vmax.f32 %v1216_v9, 0.0  ;;  %v1543_v9 = vld [vmem:[#allocation2 + $0x78] ss:$2 sm:$0xff]  ;;  %v789_v38 = vpop.f32.mrf.mxu1  ;;  %v940_v24 = vadd.f32 %v916_v20, %v810_v12  ;;  %1661 = vmatpush.msrb.mxu2 %v1644_v6  ;;  %1904 = vmatpush.msra.mxu1 %v1893_v1 }
 0x1f3   :  { %v1887_v6 = vld [vmem:[#allocation8 + $0x3a0] sm:$0xff] }
 0x1f4   :  { %1302 = vst [vmem:[#allocation2 + $0xd8] sm:$0xff] %v1232_v42  ;;  %1587 = vmatmul.f32.vlgmr.msrb.gmra.mxu1 %v1539_v10  ;;  %v1479_v10 = vld [vmem:[#allocation8 + $0x130] sm:$0xff]  ;;  %1662 = vmatpush.msrb.mxu2 %v1643_v14  ;;  %v2819_v14 = vld [vmem:[#allocation20_spill] sm:$0xff] }
 0x1f5   :  { %v1167_v47 = vpop.f32.mrf.mxu0  ;;  %1842 = vmatmul.f32.gmra.mxu0 %v1791_v54  ;;  %1498 = vmatpush.msrb.mxu3 %v1479_v10  ;;  %v1886_v10 = vld [vmem:[#allocation8 + $0x398] sm:$0xff] }
 0x1f6   :  { %v1197_v11 = vadd.f32 %v1167_v47, %v1067_v5  ;;  %v551_v5 = vadd.f32 %v2530_v2, %v421_v51  ;;  %v919_v47 = vpop.f32.mrf.mxu2  ;;  %1905 = vmatpush.msra.mxu1 %v1892_v49 }
 0x1f7   :  { %1499 = vmatpush.msrb.mxu3 %v1478_v15 }
 0x1f8   :  { %v1217_v36 = vadd.f32 %v2619_v21, %v1197_v11  ;;  %v2811_v11 = vld [vmem:[#allocation15_spill] sm:$0xff]  ;;  %v681_v19 = vadd.f32 %v2812_v48, %v551_v5  ;;  %v1049_v18 = vpop.f32.mrf.mxu3 }
 0x1f9   :  { %v289_v58 = vadd.f32 %v2811_v11, %v2810_v17  ;;  %v1885_v11 = vld [vmem:[#allocation8 + $0x390] sm:$0xff] }
 0x1fa   :  { %v1233_v29 = vmax.f32 %v1217_v36, 0.0  ;;  %v1642_v36 = vld [vmem:[#allocation8 + $0x228] sm:$0xff]  ;;  %v811_v39 = vadd.f32 %v789_v38, %v681_v19  ;;  %v792_v45 = vpop.f32.mrf.mxu1 }
 0x1fb   :  { %v1350_v8 = vld [vmem:[#allocation2 + $0xd9] ss:$2 sm:$0xff]  ;;  %v1318_v55 = vld [vmem:[#allocation2 + $0xd8] ss:$2 sm:$0xff]  ;;  %v422_v50 = vadd.f32 %v2813_v61, %v289_v58  ;;  %1663 = vmatpush.msrb.mxu2 %v1642_v36  ;;  %v1732_v61 = vld [vmem:[#allocation8 + $0x2e8] sm:$0xff] }
 0x1fc   :  { %1303 = vst [vmem:[#allocation2 + $0xf0] sm:$0xff] %v1233_v29  ;;  %1402 = vmatmul.f32.vlgmr.msra.gmra.mxu3 %v1350_v8  ;;  %1443 = vmatmul.f32.gmra.mxu2 %v1318_v55  ;;  %v1070_v29 = vadd.f32 %v1046_v33, %v940_v24  ;;  %v1545_v8 = vld [vmem:[#allocation2 + $0xa8] ss:$2 sm:$0xff]  ;;  %v1477_v55 = vld [vmem:[#allocation8 + $0x120] sm:$0xff] }
 0x1fd   :  { %1590 = vmatmul.f32.gmra.mxu1 %v1541_v52  ;;  %v1170_v0 = vpop.f32.mrf.mxu0  ;;  %v1891_v52 = vld [vmem:[#allocation8 + $0x3c0] sm:$0xff]  ;;  %1500 = vmatpush.msrb.mxu3 %v1477_v55  ;;  %v552_v23 = vadd.f32 %v2814_v62, %v422_v50  ;;  %v1638_v33 = vld [vmem:[#allocation8 + $0x208] sm:$0xff] }
 0x1fe   :  { %v1198_v46 = vadd.f32 %v1170_v0, %v1068_v22  ;;  %v1641_v22 = vld [vmem:[#allocation8 + $0x220] sm:$0xff]  ;;  %v1640_v0 = vld [vmem:[#allocation8 + $0x218] sm:$0xff]  ;;  %1906 = vmatpush.msra.mxu1 %v1891_v52 }
 0x1ff   :  { %1664 = vmatpush.msrb.mxu2 %v1641_v22  ;;  %1501 = vmatpush.msrb.mxu3 %v1476_v30  ;;  %v682_v32 = vadd.f32 %v2817_v43, %v552_v23  ;;  %v1980_v43 = vld [vmem:[#allocation8 + $0x478] sm:$0xff] }
 0x200   :  { %v1218_v35 = vadd.f32 %v2619_v21, %v1198_v46  ;;  %v941_v46 = vadd.f32 %v919_v47, %v811_v39  ;;  %1907 = vmatpush.msra.mxu1 %v1890_v57  ;;  %v1052_v38 = vpop.f32.mrf.mxu3  ;;  %v2820_v47 = vld [vmem:[#allocation23_spill] sm:$0xff] }
 0x201   :  { %1665 = vmatpush.msrb.mxu2 %v1640_v0  ;;  %1502 = vmatpush.msrb.mxu3 %v1475_v59  ;;  %v812_v63 = vadd.f32 %v792_v45, %v682_v32  ;;  %v1730_v0 = vld [vmem:[#allocation8 + $0x2d8] sm:$0xff]  ;;  %v1729_v57 = vld [vmem:[#allocation8 + $0x2d0] sm:$0xff]  ;;  %v1728_v45 = vld [vmem:[#allocation8 + $0x2c8] sm:$0xff] }
 0x202   :  { %v1234_v7 = vmax.f32 %v1218_v35, 0.0  ;;  %v2816_v35 = vld [vmem:[#allocation18_spill] sm:$0xff]  ;;  %1908 = vmatpush.msra.mxu1 %v1889_v3  ;;  %v795_v58 = vpop.f32.mrf.mxu1  ;;  %v1725_v32 = vld [vmem:[#allocation8 + $0x2b0] sm:$0xff] }
 0x203   :  { %v292_v13 = vadd.f32 %v2816_v35, %v2815_v44  ;;  %1666 = vmatpush.msrb.mxu2 %v1639_v34  ;;  %1503 = vmatpush.msrb.mxu3 %v1474_v37  ;;  %v1727_v34 = vld [vmem:[#allocation8 + $0x2c0] sm:$0xff] }
 0x204   :  { %1304 = vst [vmem:[#allocation2 + $0x108] sm:$0xff] %v1234_v7  ;;  %v922_v7 = vpop.f32.mrf.mxu2  ;;  %1909 = vmatpush.msra.mxu1 %v1888_v60  ;;  %v1457_v3 = vld [vmem:[#allocation2 + $0x2] ss:$2 sm:$0xff]  ;;  %v1621_v35 = vld [vmem:[#allocation2 + $0x19] ss:$2 sm:$0xff] }
 0x205   :  { %1593 = vmatmul.f32.gmra.mxu1 %v1543_v9  ;;  %v1173_v42 = vpop.f32.mrf.mxu0  ;;  %v423_v51 = vadd.f32 %v2818_v31, %v292_v13  ;;  %v1547_v9 = vld [vmem:[#allocation2 + $0xf0] ss:$2 sm:$0xff]  ;;  %1667 = vmatpush.msrb.mxu2 %v1638_v33  ;;  %v942_v5 = vadd.f32 %v922_v7, %v812_v63  ;;  %v1867_v7 = vld [vmem:[#allocation2 + $0x31] ss:$2 sm:$0xff]  ;;  %v1977_v33 = vld [vmem:[#allocation8 + $0x460] sm:$0xff] }
 0x206   :  { %v1199_v54 = vadd.f32 %v1173_v42, %v1069_v40  ;;  %v1071_v40 = vadd.f32 %v1049_v18, %v941_v46  ;;  %v1637_v42 = vld [vmem:[#allocation8 + $0x200] sm:$0xff]  ;;  %1504 = vmatpush.msrb.mxu3 %v1473_v56  ;;  %1910 = vmatpush.msra.mxu1 %v1887_v6  ;;  %v1726_v13 = vld [vmem:[#allocation8 + $0x2b8] sm:$0xff]  ;;  %v1623_v60 = vld [vmem:[#allocation2 + $0x49] ss:$2 sm:$0xff] }
 0x207   :  { %v553_v1 = vadd.f32 %v2819_v14, %v423_v51  ;;  %1668 = vmatpush.msrb.mxu2 %v1637_v42  ;;  %v1072_v36 = vadd.f32 %v1052_v38, %v942_v5  ;;  %v1459_v37 = vld [vmem:[#allocation2 + $0x32] ss:$2 sm:$0xff]  ;;  %v1724_v31 = vld [vmem:[#allocation8 + $0x2a8] sm:$0xff] }
 0x208   :  { %v1219_v25 = vadd.f32 %v2619_v21, %v1199_v54  ;;  %v1734_v54 = vld [vmem:[#allocation8 + $0x2f8] sm:$0xff]  ;;  %1911 = vmatpush.msra.mxu1 %v1886_v10  ;;  %v1055_v22 = vpop.f32.mrf.mxu3  ;;  %v1723_v42 = vld [vmem:[#allocation8 + $0x2a0] sm:$0xff]  ;;  %v1974_v6 = vld [vmem:[#allocation8 + $0x448] sm:$0xff] }
 0x209   :  { %1735 = vmatpush.msra.mxu3 %v1734_v54  ;;  %v683_v15 = vadd.f32 %v2820_v47, %v553_v1  ;;  %2250 = vmatpush.msra.mxu2 %v1980_v43  ;;  %v1976_v51 = vld [vmem:[#allocation8 + $0x458] sm:$0xff]  ;;  %v1461_v63 = vld [vmem:[#allocation2 + $0x62] ss:$2 sm:$0xff] }
 0x20a   :  { %v1235_v16 = vmax.f32 %v1219_v25, 0.0  ;;  %v1733_v25 = vld [vmem:[#allocation8 + $0x2f0] sm:$0xff]  ;;  %1912 = vmatpush.msra.mxu1 %v1885_v11  ;;  %v1625_v54 = vld [vmem:[#allocation2 + $0x79] ss:$2 sm:$0xff]  ;;  %v1720_v11 = vld [vmem:[#allocation8 + $0x288] sm:$0xff] }
 0x20b   :  { %v1352_v27 = vld [vmem:[#allocation2 + $0x109] ss:$2 sm:$0xff]  ;;  %v1320_v2 = vld [vmem:[#allocation2 + $0x108] ss:$2 sm:$0xff]  ;;  %1736 = vmatpush.msra.mxu3 %v1733_v25  ;;  %v813_v50 = vadd.f32 %v795_v58, %v683_v15  ;;  %v1973_v38 = vld [vmem:[#allocation8 + $0x440] sm:$0xff] }
 0x20c   :  { %v1793_v41 = vld [vmem:[#allocation2 + $0x108] ss:$2 sm:$0xff]  ;;  %1305 = vst [vmem:[#allocation2 + $0x120] sm:$0xff] %v1235_v16  ;;  %1405 = vmatmul.f32.gmra.mxu3 %v1352_v27  ;;  %1446 = vmatmul.f32.gmra.mxu2 %v1320_v2  ;;  %v925_v27 = vpop.f32.mrf.mxu2  ;;  %v1722_v10 = vld [vmem:[#allocation8 + $0x298] sm:$0xff]  ;;  %v1627_v15 = vld [vmem:[#allocation2 + $0xa9] ss:$2 sm:$0xff] }
 0x20d   :  { %1596 = vmatmul.f32.gmra.mxu1 %v1545_v8  ;;  %1845 = vmatmul.f32.gmra.mxu0 %v1793_v41  ;;  %v1176_v53 = vpop.f32.mrf.mxu0  ;;  %v1884_v41 = vld [vmem:[#allocation8 + $0x388] sm:$0xff]  ;;  %v1883_v8 = vld [vmem:[#allocation8 + $0x380] sm:$0xff]  ;;  %v943_v55 = vadd.f32 %v925_v27, %v813_v50  ;;  %v1972_v14 = vld [vmem:[#allocation8 + $0x438] sm:$0xff] }
 0x20e   :  { %v1200_v26 = vadd.f32 %v1176_v53, %v1070_v29  ;;  %1737 = vmatpush.msra.mxu3 %v1732_v61  ;;  %1913 = vmatpush.msra.mxu1 %v1884_v41  ;;  %v1731_v53 = vld [vmem:[#allocation8 + $0x2e0] sm:$0xff]  ;;  %v1721_v1 = vld [vmem:[#allocation8 + $0x290] sm:$0xff]  ;;  %v1968_v58 = vld [vmem:[#allocation8 + $0x418] sm:$0xff] }
 0x20f   :  { %v1971_v5 = vld [vmem:[#allocation8 + $0x430] sm:$0xff]  ;;  %v1873_v27 = vld [vmem:[#allocation2 + $0xc1] ss:$2 sm:$0xff]  ;;  %v2275_v41 = vld [vmem:[#allocation8 + $0x378] sm:$0xff] }
 0x210   :  { %v1220_v20 = vadd.f32 %v2619_v21, %v1200_v26  ;;  %1738 = vmatpush.msra.mxu3 %v1731_v53  ;;  %1914 = vmatpush.msra.mxu1 %v1883_v8  ;;  %v1073_v26 = vadd.f32 %v1055_v22, %v943_v55  ;;  %v1463_v25 = vld [vmem:[#allocation2 + $0x92] ss:$2 sm:$0xff]  ;;  %v1871_v47 = vld [vmem:[#allocation2 + $0x91] ss:$2 sm:$0xff]  ;;  %v2277_v55 = vld [vmem:[#allocation8 + $0x368] sm:$0xff] }
 0x211   :  { %v1465_v61 = vld [vmem:[#allocation2 + $0xda] ss:$2 sm:$0xff]  ;;  %v1629_v50 = vld [vmem:[#allocation2 + $0xf1] ss:$2 sm:$0xff]  ;;  %v1467_v53 = vld [vmem:[#allocation2 + $0x10a] ss:$2 sm:$0xff] }
 0x212   :  { %v1236_v4 = vmax.f32 %v1220_v20, 0.0  ;;  %1739 = vmatpush.msra.mxu3 %v1730_v0  ;;  %1981 = vmatpush.msrb.mxu1 %v1980_v43  ;;  %v2276_v8 = vld [vmem:[#allocation8 + $0x370] sm:$0xff] }
 0x213   :  { %v1549_v49 = vld [vmem:[#allocation2 + $0x120] ss:$2 sm:$0xff]  ;;  %v1875_v22 = vld [vmem:[#allocation2 + $0x109] ss:$2 sm:$0xff] }
 0x214   :  { %1306 = vst [vmem:[#allocation2 + $0x138] sm:$0xff] %v1236_v4  ;;  %1740 = vmatpush.msra.mxu3 %v1729_v57  ;;  %v1978_v4 = vld [vmem:[#allocation8 + $0x468] sm:$0xff] }
 0x215   :  { %1599 = vmatmul.f32.gmra.mxu1 %v1547_v9  ;;  %v1179_v28 = vpop.f32.mrf.mxu0  ;;  %v2281_v57 = vld [vmem:[#allocation8 + $0x348] sm:$0xff] }
 0x216   :  { %v1201_v12 = vadd.f32 %v1179_v28, %v1071_v40  ;;  %1741 = vmatpush.msra.mxu3 %v1728_v45  ;;  %v1975_v28 = vld [vmem:[#allocation8 + $0x450] sm:$0xff] }
 0x218   :  { %v1221_v24 = vadd.f32 %v2619_v21, %v1201_v12  ;;  %1742 = vmatpush.msra.mxu3 %v1727_v34  ;;  %v1869_v12 = vld [vmem:[#allocation2 + $0x61] ss:$2 sm:$0xff]  ;;  %v2284_v34 = vld [vmem:[#allocation8 + $0x330] sm:$0xff] }
 0x21a   :  { %v1237_v17 = vmax.f32 %v1221_v24, 0.0  ;;  %1743 = vmatpush.msra.mxu3 %v1726_v13  ;;  %v1970_v24 = vld [vmem:[#allocation8 + $0x428] sm:$0xff] }
 0x21b   :  { %v1354_v48 = vld [vmem:[#allocation2 + $0x139] ss:$2 sm:$0xff]  ;;  %v1322_v19 = vld [vmem:[#allocation2 + $0x138] ss:$2 sm:$0xff] }
 0x21c   :  { %v1795_v16 = vld [vmem:[#allocation2 + $0x138] ss:$2 sm:$0xff]  ;;  %1307 = vst [vmem:[#allocation2 + $0x150] sm:$0xff] %v1237_v17  ;;  %1408 = vmatmul.f32.gmra.mxu3 %v1354_v48  ;;  %1449 = vmatmul.f32.gmra.mxu2 %v1322_v19 }
 0x21d   :  { %1602 = vmatmul.f32.gmra.mxu1 %v1549_v49  ;;  %1848 = vmatmul.f32.gmra.mxu0 %v1795_v16  ;;  %v1182_v2 = vpop.f32.mrf.mxu0  ;;  %v1969_v17 = vld [vmem:[#allocation8 + $0x420] sm:$0xff] }
 0x21e   :  { %v1202_v29 = vadd.f32 %v1182_v2, %v1072_v36  ;;  %1744 = vmatpush.msra.mxu3 %v1725_v32  ;;  %v1967_v36 = vld [vmem:[#allocation8 + $0x410] sm:$0xff]  ;;  %v1719_v49 = vld [vmem:[#allocation8 + $0x280] sm:$0xff]  ;;  %v1966_v2 = vld [vmem:[#allocation8 + $0x408] sm:$0xff] }
 0x220   :  { %v1222_v18 = vadd.f32 %v2619_v21, %v1202_v29  ;;  %1745 = vmatpush.msra.mxu3 %v1724_v31  ;;  %v1965_v29 = vld [vmem:[#allocation8 + $0x400] sm:$0xff] }
 0x221   :  { %v1881_v31 = vld [vmem:[#allocation2 + $0x199] ss:$2 sm:$0xff] }
 0x222   :  { %v1238_v52 = vmax.f32 %v1222_v18, 0.0  ;;  %1746 = vmatpush.msra.mxu3 %v1723_v42  ;;  %v2278_v18 = vld [vmem:[#allocation8 + $0x360] sm:$0xff] }
 0x223   :  { %v1551_v39 = vld [vmem:[#allocation2 + $0x150] ss:$2 sm:$0xff]  ;;  %v1633_v45 = vld [vmem:[#allocation2 + $0x151] ss:$2 sm:$0xff] }
 0x224   :  { %1308 = vst [vmem:[#allocation2 + $0x168] sm:$0xff] %v1238_v52  ;;  %1747 = vmatpush.msra.mxu3 %v1722_v10  ;;  %v2279_v52 = vld [vmem:[#allocation8 + $0x358] sm:$0xff]  ;;  %v1955_v42 = vld [vmem:[#allocation2 + $0xc2] ss:$2 sm:$0xff] }
 0x225   :  { %1605 = vmatmul.f32.gmra.mxu1 %v1551_v39  ;;  %v1185_v30 = vpop.f32.mrf.mxu0  ;;  %v1631_v39 = vld [vmem:[#allocation2 + $0x121] ss:$2 sm:$0xff] }
 0x226   :  { %v1203_v62 = vadd.f32 %v1185_v30, %v1073_v26  ;;  %1748 = vmatpush.msra.mxu3 %v1721_v1  ;;  %v2280_v26 = vld [vmem:[#allocation8 + $0x350] sm:$0xff] }
 0x227   :  { %v1951_v1 = vld [vmem:[#allocation2 + $0x62] ss:$2 sm:$0xff] }
 0x228   :  { %v1223_v23 = vadd.f32 %v2619_v21, %v1203_v62  ;;  %v1979_v21 = vld [vmem:[#allocation8 + $0x470] sm:$0xff]  ;;  %1749 = vmatpush.msra.mxu3 %v1720_v11 }
 0x229   :  { %2251 = vmatpush.msra.mxu2 %v1979_v21  ;;  %1982 = vmatpush.msrb.mxu1 %v1979_v21  ;;  %v2287_v21 = vld [vmem:[#allocation8 + $0x318] sm:$0xff] }
 0x22a   :  { %v1239_v46 = vmax.f32 %v1223_v23, 0.0  ;;  %1750 = vmatpush.msra.mxu3 %v1719_v49  ;;  %v2282_v23 = vld [vmem:[#allocation8 + $0x340] sm:$0xff] }
 0x22b   :  { %v1356_v20 = vld [vmem:[#allocation2 + $0x169] ss:$2 sm:$0xff]  ;;  %v1324_v59 = vld [vmem:[#allocation2 + $0x168] ss:$2 sm:$0xff]  ;;  %2252 = vmatpush.msra.mxu2 %v1978_v4  ;;  %1983 = vmatpush.msrb.mxu1 %v1978_v4 }
 0x22c   :  { %1309 = vst [vmem:[#allocation2 + $0x180] sm:$0xff] %v1239_v46  ;;  %1411 = vmatmul.f32.gmra.mxu3 %v1356_v20  ;;  %1452 = vmatmul.f32.gmra.mxu2 %v1324_v59  ;;  %v1469_v46 = vld [vmem:[#allocation2 + $0x13a] ss:$2 sm:$0xff]  ;;  %v1877_v20 = vld [vmem:[#allocation2 + $0x139] ss:$2 sm:$0xff]  ;;  %v2288_v4 = vld [vmem:[#allocation8 + $0x310] sm:$0xff] }
 0x22d   :  { %1984 = vmatpush.msrb.mxu1 %v1977_v33  ;;  %2253 = vmatpush.msra.mxu2 %v1977_v33  ;;  %v2283_v59 = vld [vmem:[#allocation8 + $0x338] sm:$0xff]  ;;  %v1879_v43 = vld [vmem:[#allocation2 + $0x169] ss:$2 sm:$0xff] }
 0x22e   :  { %v1471_v13 = vld [vmem:[#allocation2 + $0x16a] ss:$2 sm:$0xff] }
 0x22f   :  { %1985 = vmatpush.msrb.mxu1 %v1976_v51  ;;  %2254 = vmatpush.msra.mxu2 %v1976_v51  ;;  %v2290_v51 = vld [vmem:[#allocation8 + $0x300] sm:$0xff] }
 0x231   :  { %1986 = vmatpush.msrb.mxu1 %v1975_v28  ;;  %2255 = vmatpush.msra.mxu2 %v1975_v28 }
 0x233   :  { %v1553_v44 = vld [vmem:[#allocation2 + $0x180] ss:$2 sm:$0xff]  ;;  %1987 = vmatpush.msrb.mxu1 %v1974_v6  ;;  %2256 = vmatpush.msra.mxu2 %v1974_v6  ;;  %v1635_v32 = vld [vmem:[#allocation2 + $0x181] ss:$2 sm:$0xff] }
 0x234   :  { %1505 = vmatmul.f32.vlgmr.msrb.gmra.mxu3 %v1457_v3  ;;  %1608 = vmatmul.f32.gmra.mxu1 %v1553_v44  ;;  %v2285_v3 = vld [vmem:[#allocation8 + $0x328] sm:$0xff] }
 0x235   :  { %1669 = vmatmul.f32.vlgmr.msrb.gmra.mxu2 %v1621_v35  ;;  %1988 = vmatpush.msrb.mxu1 %v1973_v38  ;;  %v2286_v35 = vld [vmem:[#allocation8 + $0x320] sm:$0xff]  ;;  %v1705_v6 = vld [vmem:[#allocation2 + $0x4a] ss:$2 sm:$0xff] }
 0x236   :  { %2257 = vmatpush.msra.mxu2 %v1973_v38  ;;  %2234 = vmatpush.msrb.mxu3 %v2275_v41 }
 0x237   :  { %1989 = vmatpush.msrb.mxu1 %v1972_v14 }
 0x238   :  { %2258 = vmatpush.msra.mxu2 %v1972_v14  ;;  %2235 = vmatpush.msrb.mxu3 %v2276_v8  ;;  %v1707_v14 = vld [vmem:[#allocation2 + $0x7a] ss:$2 sm:$0xff] }
 0x239   :  { %v1391_v40 = vpop.f32.mrf.mxu1  ;;  %1990 = vmatpush.msrb.mxu1 %v1971_v5  ;;  %v1717_v8 = vld [vmem:[#allocation2 + $0x182] ss:$2 sm:$0xff] }
 0x23a   :  { %2259 = vmatpush.msra.mxu2 %v1971_v5  ;;  %2236 = vmatpush.msrb.mxu3 %v2277_v55  ;;  %v1957_v5 = vld [vmem:[#allocation2 + $0x10a] ss:$2 sm:$0xff] }
 0x23b   :  { %1991 = vmatpush.msrb.mxu1 %v1970_v24 }
 0x23c   :  { %1508 = vmatmul.f32.gmra.mxu3 %v1459_v37  ;;  %1915 = vmatmul.f32.vlgmr.msra.gmra.mxu1 %v1867_v7  ;;  %v2289_v7 = vld [vmem:[#allocation8 + $0x308] sm:$0xff] }
 0x23d   :  { %1672 = vmatmul.f32.gmra.mxu2 %v1623_v60  ;;  %1992 = vmatpush.msrb.mxu1 %v1969_v17 }
 0x23e   :  { %2260 = vmatpush.msra.mxu2 %v1970_v24  ;;  %2237 = vmatpush.msrb.mxu3 %v2278_v18 }
 0x23f   :  { %v1432_v9 = vpop.f32.mrf.mxu2  ;;  %1993 = vmatpush.msrb.mxu1 %v1968_v58 }
 0x240   :  { %v2726_v56 = vadd.f32 %v1432_v9, %v1391_v40  ;;  %2261 = vmatpush.msra.mxu2 %v1969_v17  ;;  %2238 = vmatpush.msrb.mxu3 %v2279_v52  ;;  %v1703_v40 = vld [vmem:[#allocation2 + $0x1a] ss:$2 sm:$0xff] }
 0x241   :  { %1994 = vmatpush.msrb.mxu1 %v1967_v36  ;;  %v1953_v9 = vld [vmem:[#allocation2 + $0x92] ss:$2 sm:$0xff] }
 0x242   :  { %2262 = vmatpush.msra.mxu2 %v1968_v58  ;;  %2239 = vmatpush.msrb.mxu3 %v2280_v26  ;;  %v1711_v58 = vld [vmem:[#allocation2 + $0xf2] ss:$2 sm:$0xff] }
 0x243   :  { %1995 = vmatpush.msrb.mxu1 %v1966_v2  ;;  %v1797_v52 = vld [vmem:[#allocation2 + $0x168] ss:$2 sm:$0xff] }
 0x244   :  { %1511 = vmatmul.f32.gmra.mxu3 %v1461_v63  ;;  %1918 = vmatmul.f32.gmra.mxu1 %v1869_v12  ;;  %v1949_v63 = vld [vmem:[#allocation2 + $0x32] ss:$2 sm:$0xff] }
 0x245   :  { %1675 = vmatmul.f32.gmra.mxu2 %v1625_v54  ;;  %1996 = vmatpush.msrb.mxu1 %v1965_v29 }
 0x246   :  { %2263 = vmatpush.msra.mxu2 %v1967_v36  ;;  %2240 = vmatpush.msrb.mxu3 %v2281_v57  ;;  %v1713_v36 = vld [vmem:[#allocation2 + $0x122] ss:$2 sm:$0xff] }
 0x247   :  { %v1799_v57 = vld [vmem:[#allocation2 + $0x198] ss:$2 sm:$0xff] }
 0x248   :  { %2264 = vmatpush.msra.mxu2 %v1966_v2  ;;  %2241 = vmatpush.msrb.mxu3 %v2282_v23 }
 0x249   :  { %v1394_v48 = vpop.f32.mrf.mxu1 }
 0x24a   :  { %2265 = vmatpush.msra.mxu2 %v1965_v29  ;;  %2242 = vmatpush.msrb.mxu3 %v2283_v59 }
 0x24c   :  { %1514 = vmatmul.f32.gmra.mxu3 %v1463_v25  ;;  %1921 = vmatmul.f32.gmra.mxu1 %v1871_v47  ;;  %v1709_v25 = vld [vmem:[#allocation2 + $0xaa] ss:$2 sm:$0xff]  ;;  %v1959_v47 = vld [vmem:[#allocation2 + $0x13a] ss:$2 sm:$0xff] }
 0x24d   :  { %1678 = vmatmul.f32.gmra.mxu2 %v1627_v15  ;;  %2243 = vmatpush.msrb.mxu3 %v2284_v34 }
 0x24f   :  { %v1435_v19 = vpop.f32.mrf.mxu2  ;;  %2244 = vmatpush.msrb.mxu3 %v2285_v3 }
 0x250   :  { %v2728_v16 = vadd.f32 %v1435_v19, %v1394_v48  ;;  %v1961_v19 = vld [vmem:[#allocation2 + $0x16a] ss:$2 sm:$0xff] }
 0x251   :  { %2245 = vmatpush.msrb.mxu3 %v2286_v35 }
 0x253   :  { %2246 = vmatpush.msrb.mxu3 %v2287_v21 }
 0x254   :  { %1517 = vmatmul.f32.gmra.mxu3 %v1465_v61  ;;  %1924 = vmatmul.f32.gmra.mxu1 %v1873_v27  ;;  %v1715_v61 = vld [vmem:[#allocation2 + $0x152] ss:$2 sm:$0xff] }
 0x255   :  { %1681 = vmatmul.f32.gmra.mxu2 %v1629_v50  ;;  %2247 = vmatpush.msrb.mxu3 %v2288_v4  ;;  %v1963_v50 = vld [vmem:[#allocation2 + $0x19a] ss:$2 sm:$0xff] }
 0x257   :  { %2248 = vmatpush.msrb.mxu3 %v2289_v7 }
 0x259   :  { %v1397_v30 = vpop.f32.mrf.mxu1  ;;  %2249 = vmatpush.msrb.mxu3 %v2290_v51 }
 0x25c   :  { %1520 = vmatmul.f32.gmra.mxu3 %v1467_v53  ;;  %1927 = vmatmul.f32.gmra.mxu1 %v1875_v22 }
 0x25d   :  { %1684 = vmatmul.f32.gmra.mxu2 %v1631_v39 }
 0x25f   :  { %v1438_v0 = vpop.f32.mrf.mxu2 }
 0x260   :  { %v2730_v62 = vadd.f32 %v1438_v0, %v1397_v30 }
 0x264   :  { %1523 = vmatmul.f32.gmra.mxu3 %v1469_v46  ;;  %1930 = vmatmul.f32.gmra.mxu1 %v1877_v20 }
 0x265   :  { %1687 = vmatmul.f32.gmra.mxu2 %v1633_v45 }
 0x269   :  { %v1400_v44 = vpop.f32.mrf.mxu1 }
 0x26c   :  { %1526 = vmatmul.f32.gmra.mxu3 %v1471_v13  ;;  %1933 = vmatmul.f32.gmra.mxu1 %v1879_v43 }
 0x26d   :  { %1690 = vmatmul.f32.gmra.mxu2 %v1635_v32 }
 0x26f   :  { %v1441_v37 = vpop.f32.mrf.mxu2 }
 0x270   :  { %v2732_v33 = vadd.f32 %v1441_v37, %v1400_v44 }
 0x271   :  { %v2734_v60 = vpop.f32.mrf.mxu1 }
 0x274   :  { %1751 = vmatmul.f32.vlgmr.msra.gmra.mxu3 %v1703_v40  ;;  %1936 = vmatmul.f32.gmra.mxu1 %v1881_v31 }
 0x275   :  { %2003 = vmatmul.f32.vlgmr.msra.gmra.mxu2 %v1953_v9 }
 0x27a   :  { %v1591_v28 = vpop.f32.mrf.mxu1 }
 0x27c   :  { %1754 = vmatmul.f32.gmra.mxu3 %v1705_v6  ;;  %1997 = vmatmul.f32.vlgmr.msrb.gmra.mxu1 %v1949_v63 }
 0x27d   :  { %2006 = vmatmul.f32.gmra.mxu2 %v1955_v42 }
 0x27f   :  { %v1403_v12 = vpop.f32.mrf.mxu3  ;;  %v1444_v54 = vpop.f32.mrf.mxu2 }
 0x280   :  { %v2736_v38 = vadd.f32 %v1444_v54, %v1403_v12 }
 0x282   :  { %v1594_v10 = vpop.f32.mrf.mxu1 }
 0x284   :  { %1757 = vmatmul.f32.gmra.mxu3 %v1707_v14  ;;  %2000 = vmatmul.f32.gmra.mxu1 %v1951_v1 }
 0x285   :  { %2009 = vmatmul.f32.gmra.mxu2 %v1957_v5  ;;  %v1834_v5 = vpop.f32.mrf.mxu0 }
 0x28a   :  { %v1597_v24 = vpop.f32.mrf.mxu1 }
 0x28c   :  { %1760 = vmatmul.f32.gmra.mxu3 %v1709_v25 }
 0x28d   :  { %2012 = vmatmul.f32.gmra.mxu2 %v1959_v47 }
 0x28f   :  { %v1406_v15 = vpop.f32.mrf.mxu3  ;;  %v1447_v17 = vpop.f32.mrf.mxu2 }
 0x290   :  { %v1448_v11 = vadd.f32 %v1447_v17, %v1406_v15 }
 0x292   :  { %v1600_v48 = vpop.f32.mrf.mxu1 }
 0x294   :  { %1763 = vmatmul.f32.gmra.mxu3 %v1711_v58  ;;  %v2765_v58 = vld [vmem:[%s2797_s4] ss:$0 sm:$0xff]  ;;  %s2399_s4 = smov [#allocation9]  }
 0x295   :  { %2015 = vmatmul.f32.gmra.mxu2 %v1961_v19  ;;  %v1837_v19 = vpop.f32.mrf.mxu0  ;;  %s2062_s10 = sshll.u32 %s2399_s4, 4  ;;  %s2063_s10 = int_to_ptr.vmem [resolvable:$true] %s2062_s10 }
 0x29a   :  { %v1603_v49 = vpop.f32.mrf.mxu1 }
 0x29c   :  { %1766 = vmatmul.f32.gmra.mxu3 %v1713_v36 }
 0x29d   :  { %2018 = vmatmul.f32.gmra.mxu2 %v1963_v50 }
 0x29f   :  { %v1409_v27 = vpop.f32.mrf.mxu3  ;;  %v1450_v2 = vpop.f32.mrf.mxu2 }
 0x2a0   :  { %v1451_v41 = vadd.f32 %v1450_v2, %v1409_v27 }
 0x2a2   :  { %v1606_v29 = vpop.f32.mrf.mxu1 }
 0x2a4   :  { %1769 = vmatmul.f32.gmra.mxu3 %v1715_v61 }
 0x2ac   :  { %1772 = vmatmul.f32.gmra.mxu3 %v1717_v8 }
 0x2af   :  { %v1412_v55 = vpop.f32.mrf.mxu3  ;;  %v1453_v18 = vpop.f32.mrf.mxu2 }
 0x2b0   :  { %v1454_v53 = vadd.f32 %v1453_v18, %v1412_v55  ;;  %v1840_v55 = vpop.f32.mrf.mxu0 }
 0x2b1   :  { %v1609_v22 = vpop.f32.mrf.mxu1 }
 0x2b4   :  { %1851 = vmatmul.f32.vlgmr.msrb.gmra.mxu3 %v1797_v52 }
 0x2b7   :  { %v1506_v39 = vpop.f32.mrf.mxu3 }
 0x2b8   :  { %v1530_v26 = vadd.f32 %v1506_v39, %v2726_v56  ;;  %v1670_v30 = vpop.f32.mrf.mxu2 }
 0x2b9   :  { %v1916_v0 = vpop.f32.mrf.mxu1 }
 0x2ba   :  { %v1612_v23 = vadd.f32 %v2734_v60, %v1530_v26 }
 0x2bc   :  { %1854 = vmatmul.f32.gmra.mxu3 %v1799_v57 }
 0x2bf   :  { %v1509_v46 = vpop.f32.mrf.mxu3 }
 0x2c0   :  { %v1531_v20 = vadd.f32 %v1509_v46, %v2728_v16  ;;  %v1673_v59 = vpop.f32.mrf.mxu2 }
 0x2c1   :  { %v1919_v45 = vpop.f32.mrf.mxu1 }
 0x2c2   :  { %v1613_v34 = vadd.f32 %v1591_v28, %v1531_v20  ;;  %v1843_v20 = vpop.f32.mrf.mxu0 }
 0x2c4   :  { %v1695_v36 = vadd.f32 %v1673_v59, %v1613_v34 }
 0x2c7   :  { %v1512_v3 = vpop.f32.mrf.mxu3 }
 0x2c8   :  { %v1532_v44 = vadd.f32 %v1512_v3, %v2730_v62  ;;  %v1676_v43 = vpop.f32.mrf.mxu2 }
 0x2c9   :  { %v1922_v35 = vpop.f32.mrf.mxu1 }
 0x2ca   :  { %v1614_v13 = vadd.f32 %v1594_v10, %v1532_v44 }
 0x2cc   :  { %v1696_v18 = vadd.f32 %v1676_v43, %v1614_v13 }
 0x2cf   :  { %v1515_v21 = vpop.f32.mrf.mxu3 }
 0x2d0   :  { %v1533_v56 = vadd.f32 %v1515_v21, %v2732_v33  ;;  %v1679_v37 = vpop.f32.mrf.mxu2 }
 0x2d1   :  { %v2743_v32 = vpop.f32.mrf.mxu1 }
 0x2d2   :  { %v1615_v4 = vadd.f32 %v1597_v24, %v1533_v56  ;;  %v1694_v24 = vadd.f32 %v1670_v30, %v1612_v23 }
 0x2d4   :  { %v1697_v23 = vadd.f32 %v1679_v37, %v1615_v4 }
 0x2d7   :  { %v1518_v7 = vpop.f32.mrf.mxu3 }
 0x2d8   :  { %v1534_v60 = vadd.f32 %v1518_v7, %v2736_v38  ;;  %v1682_v51 = vpop.f32.mrf.mxu2 }
 0x2d9   :  { %v2746_v16 = vpop.f32.mrf.mxu1 }
 0x2da   :  { %v1616_v31 = vadd.f32 %v1600_v48, %v1534_v60 }
 0x2dc   :  { %v1698_v21 = vadd.f32 %v1682_v51, %v1616_v31 }
 0x2df   :  { %v1521_v40 = vpop.f32.mrf.mxu3 }
 0x2e0   :  { %v1535_v9 = vadd.f32 %v1521_v40, %v1448_v11  ;;  %v1685_v33 = vpop.f32.mrf.mxu2 }
 0x2e1   :  { %v2748_v62 = vpop.f32.mrf.mxu1 }
 0x2e2   :  { %v2750_v28 = vadd.f32 %v1603_v49, %v1535_v9 }
 0x2e7   :  { %v1524_v42 = vpop.f32.mrf.mxu3 }
 0x2e8   :  { %v1536_v6 = vadd.f32 %v1524_v42, %v1451_v41  ;;  %v2760_v1 = vpop.f32.mrf.mxu2 }
 0x2e9   :  { %v2752_v63 = vpop.f32.mrf.mxu1 }
 0x2ea   :  { %v2754_v12 = vadd.f32 %v1606_v29, %v1536_v6  ;;  %v1699_v6 = vadd.f32 %v1685_v33, %v2750_v28 }
 0x2ec   :  { %v1700_v28 = vadd.f32 %v2760_v1, %v2754_v12 }
 0x2ef   :  { %v1527_v54 = vpop.f32.mrf.mxu3 }
 0x2f0   :  { %v1537_v10 = vadd.f32 %v1527_v54, %v1454_v53  ;;  %v2767_v48 = vpop.f32.mrf.mxu2 }
 0x2f1   :  { %v2756_v38 = vpop.f32.mrf.mxu1 }
 0x2f2   :  { %v2758_v14 = vadd.f32 %v1609_v22, %v1537_v10 }
 0x2f7   :  { %v1752_v25 = vpop.f32.mrf.mxu3 }
 0x2f8   :  { %v1776_v47 = vadd.f32 %v1752_v25, %v1694_v24  ;;  %v2004_v22 = vpop.f32.mrf.mxu2 }
 0x2f9   :  { %v1998_v17 = vpop.f32.mrf.mxu1 }
 0x2fa   :  { %v1858_v15 = vadd.f32 %v1834_v5, %v1776_v47 }
 0x2fc   :  { %v1940_v11 = vadd.f32 %v1916_v0, %v1858_v15 }
 0x2fe   :  { %v2022_v49 = vadd.f32 %v1998_v17, %v1940_v11 }
 0x2ff   :  { %v1755_v27 = vpop.f32.mrf.mxu3 }
 0x300   :  { %v2034_v2 = vadd.f32 %v2765_v58, %v2022_v49  ;;  %v1777_v41 = vadd.f32 %v1755_v27, %v1695_v36  ;;  %v2007_v3 = vpop.f32.mrf.mxu2 }
 0x301   :  { %v2001_v8 = vpop.f32.mrf.mxu1 }
 0x302   :  { %v2042_v61 = vmax.f32 %v2034_v2, 0.0  ;;  %v1859_v50 = vadd.f32 %v1837_v19, %v1777_v41 }
 0x304   :  { %2050 = vst [vmem:[#allocation9] sm:$0xff] %v2042_v61  ;;  %v1941_v29 = vadd.f32 %v1919_v45, %v1859_v50 }
 0x306   :  { %v2023_v53 = vadd.f32 %v2001_v8, %v1941_v29 }
 0x307   :  { %v1758_v52 = vpop.f32.mrf.mxu3 }
 0x308   :  { %v2035_v39 = vadd.f32 %v2765_v58, %v2023_v53  ;;  %v1778_v26 = vadd.f32 %v1758_v52, %v1696_v18  ;;  %v2010_v9 = vpop.f32.mrf.mxu2 }
 0x30a   :  { %v2043_v30 = vmax.f32 %v2035_v39, 0.0  ;;  %v1860_v0 = vadd.f32 %v1840_v55, %v1778_v26 }
 0x30c   :  { %2051 = vst [vmem:[#allocation9 + $0x8] sm:$0xff] %v2043_v30  ;;  %v1942_v57 = vadd.f32 %v1922_v35, %v1860_v0  ;;  %v1846_v35 = vpop.f32.mrf.mxu0 }
 0x30e   :  { %v2024_v46 = vadd.f32 %v2004_v22, %v1942_v57 }
 0x30f   :  { %v1761_v59 = vpop.f32.mrf.mxu3 }
 0x310   :  { %v2036_v34 = vadd.f32 %v2765_v58, %v2024_v46  ;;  %v1779_v45 = vadd.f32 %v1761_v59, %v1697_v23  ;;  %v2013_v47 = vpop.f32.mrf.mxu2 }
 0x312   :  { %v2044_v44 = vmax.f32 %v2036_v34, 0.0  ;;  %v1861_v13 = vadd.f32 %v1843_v20, %v1779_v45 }
 0x314   :  { %2052 = vst [vmem:[#allocation9 + $0x10] sm:$0xff] %v2044_v44  ;;  %v1943_v43 = vadd.f32 %v2743_v32, %v1861_v13  ;;  %v1849_v31 = vpop.f32.mrf.mxu0 }
 0x316   :  { %v2025_v56 = vadd.f32 %v2007_v3, %v1943_v43 }
 0x317   :  { %v1764_v7 = vpop.f32.mrf.mxu3 }
 0x318   :  { %v2037_v60 = vadd.f32 %v2765_v58, %v2025_v56  ;;  %v1780_v40 = vadd.f32 %v1764_v7, %v1698_v21  ;;  %v2016_v27 = vpop.f32.mrf.mxu2 }
 0x31a   :  { %v2045_v4 = vmax.f32 %v2037_v60, 0.0  ;;  %v1862_v37 = vadd.f32 %v1846_v35, %v1780_v40 }
 0x31c   :  { %2053 = vst [vmem:[#allocation9 + $0x18] sm:$0xff] %v2045_v4  ;;  %v1944_v42 = vadd.f32 %v2746_v16, %v1862_v37 }
 0x31e   :  { %v2026_v54 = vadd.f32 %v2010_v9, %v1944_v42 }
 0x31f   :  { %v1767_v10 = vpop.f32.mrf.mxu3 }
 0x320   :  { %v2038_v5 = vadd.f32 %v2765_v58, %v2026_v54  ;;  %v1781_v32 = vadd.f32 %v1767_v10, %v1699_v6  ;;  %v2019_v18 = vpop.f32.mrf.mxu2 }
 0x322   :  { %v2046_v51 = vmax.f32 %v2038_v5, 0.0  ;;  %v1863_v24 = vadd.f32 %v1849_v31, %v1781_v32 }
 0x324   :  { %2054 = vst [vmem:[#allocation9 + $0x20] sm:$0xff] %v2046_v51  ;;  %v1945_v25 = vadd.f32 %v2748_v62, %v1863_v24  ;;  %v1701_v62 = vadd.f32 %v2767_v48, %v2758_v14 }
 0x326   :  { %v2027_v15 = vadd.f32 %v2013_v47, %v1945_v25 }
 0x327   :  { %v1770_v17 = vpop.f32.mrf.mxu3 }
 0x328   :  { %v2039_v11 = vadd.f32 %v2765_v58, %v2027_v15  ;;  %v1782_v33 = vadd.f32 %v1770_v17, %v1700_v28 }
 0x32a   :  { %v2047_v19 = vmax.f32 %v2039_v11, 0.0 }
 0x32c   :  { %2055 = vst [vmem:[#allocation9 + $0x28] sm:$0xff] %v2047_v19 }
 0x32f   :  { %v1773_v16 = vpop.f32.mrf.mxu3 }
 0x330   :  { %v1783_v61 = vadd.f32 %v1773_v16, %v1701_v62 }
 0x337   :  { %v1852_v36 = vpop.f32.mrf.mxu3 }
 0x338   :  { %v1864_v49 = vadd.f32 %v1852_v36, %v1782_v33 }
 0x33a   :  { %v1946_v2 = vadd.f32 %v2752_v63, %v1864_v49 }
 0x33c   :  { %v2028_v41 = vadd.f32 %v2016_v27, %v1946_v2 }
 0x33e   :  { %v2040_v50 = vadd.f32 %v2765_v58, %v2028_v41 }
 0x33f   :  { %v1855_v29 = vpop.f32.mrf.mxu3 }
 0x340   :  { %v2048_v8 = vmax.f32 %v2040_v50, 0.0  ;;  %v1865_v55 = vadd.f32 %v1855_v29, %v1783_v61 }
 0x342   :  { %2056 = vst [vmem:[#allocation9 + $0x30] sm:$0xff] %v2048_v8  ;;  %v1947_v12 = vadd.f32 %v2756_v38, %v1865_v55 }
 0x344   :  { %v2029_v1 = vadd.f32 %v2019_v18, %v1947_v12 }
 0x346   :  { %v2041_v63 = vadd.f32 %v2765_v58, %v2029_v1 }
 0x348   :  { %v2049_v14 = vmax.f32 %v2041_v63, 0.0 }
 0x34a   :  { %2057 = vst [vmem:[#allocation9 + $0x38] sm:$0xff] %v2049_v14 }
 0x34b   :  { %2070 = dma.vmem_to_hbm [thread:$0]  %s2063_s10, 1024, %s2065_s13, [#allocation5], %s2394_s26, %s2394_s26, %s2395_s27  }
 0x34c   :  { %2391 = dma.done.wait [#allocation5], 1024  }
 0x34d   :  { %2392 = vsyncadd [#allocation5], 4294966272 }
 0x34e   :  { %2075 = vsyncpa [#allocation4], 1 }
 0x34f   :  { %2076 = vsyncpa [#allocation7], 1 }
 0x350   :  { %2077 = vsyncpa [#allocation5], 1 }

</bundles_post_ra>
